<compile_context>
chip_gen: v7x
topology: tpu7x:2x2x1
jax: 0.10.0
libtpu: 0.0.40
codegen_flags: <defaults>
</compile_context>

<pallas_src>
import functools

import numpy as np
import jax
import jax.numpy as jnp
from jax import lax
from jax.experimental import pallas as pl
from jax.experimental.pallas import tpu as pltpu


# ---------------------------------------------------------------------------
# Pallas kernel: `block_b` batch elements per grid step
# ---------------------------------------------------------------------------

def _conformer_conv_kernel(x_ref, lng_ref, lnb_ref,
                           w1a_ref, b1a_ref, w1b_ref, b1b_ref,
                           wdw_ref, bns_ref, bnb_ref,
                           w2_ref, b2_ref,
                           o_ref,
                           pad_ref,
                           *, seq_len, channels, ksize, block_b):
    f32 = jnp.float32
    T, C, K = seq_len, channels, ksize
    pad = (K - 1) // 2

    gamma = lng_ref[...]          # (1, C) LayerNorm weight
    beta = lnb_ref[...]           # (1, C) LayerNorm bias
    w1a = w1a_ref[...]            # (C, C) pointwise-1 "output" half (GLU)
    b1a = b1a_ref[...]            # (1, C)
    w1b = w1b_ref[...]            # (C, C) pointwise-1 "gate" half (GLU)
    b1b = b1b_ref[...]            # (1, C)
    bn_scale = bns_ref[...]       # (1, C) folded eval-mode BatchNorm scale
    bn_shift = bnb_ref[...]       # (1, C) folded eval-mode BatchNorm shift
    w2 = w2_ref[...]              # (C, C) pointwise-2 weight
    b2 = b2_ref[...]              # (1, C)

    # Zero the padded depthwise scratch once; the interior rows are rewritten
    # for every batch element, the borders stay zero (SAME padding).
    pad_ref[...] = jnp.zeros((T + K - 1, C), f32)

    for bb in range(block_b):     # static unroll over the batch block
        x = x_ref[bb]             # (T, C)

        # ---- LayerNorm over channels (torch eps=1e-5, biased variance) ----
        mean = jnp.mean(x, axis=-1, keepdims=True)
        var = jnp.mean((x - mean) ** 2, axis=-1, keepdims=True)
        xn = (x - mean) * lax.rsqrt(var + 1e-5) * gamma + beta

        # ---- Pointwise conv 1 (expansion factor 2) + GLU ----
        h_out = jnp.dot(xn, w1a, preferred_element_type=f32) + b1a    # (T, C)
        h_gate = jnp.dot(xn, w1b, preferred_element_type=f32) + b1b   # (T, C)
        glu = h_out * jax.nn.sigmoid(h_gate)                          # (T, C)

        # ---- Depthwise conv over time, SAME padding ----
        pad_ref[pl.ds(pad, T), :] = glu
        acc = jnp.zeros((T, C), f32)
        for k in range(K):        # K shifted multiply-adds (VPU)
            acc = acc + pad_ref[pl.ds(k, T), :] * wdw_ref[pl.ds(k, 1), :]

        # ---- BatchNorm (eval, folded) + Swish ----
        z = acc * bn_scale + bn_shift
        sw = z * jax.nn.sigmoid(z)

        # ---- Pointwise conv 2 ----
        y = jnp.dot(sw, w2, preferred_element_type=f32) + b2          # (T, C)

        # Dropout(p=0.1): identity in eval mode.
        o_ref[bb] = y.astype(o_ref.dtype)


# ---------------------------------------------------------------------------
# Wrapper
# ---------------------------------------------------------------------------

def conformer_conv_module(x, params, *, kernel_size, block_b=1):
    B, T, C = x.shape
    K = kernel_size
    assert B % block_b == 0, "block_b must divide the batch size"

    kernel = functools.partial(_conformer_conv_kernel, seq_len=T,
                               channels=C, ksize=K, block_b=block_b)

    def const(shape):
        n = len(shape)
        return pl.BlockSpec(shape, lambda b, _n=n: (0,) * _n)

    in_specs = [
        pl.BlockSpec((block_b, T, C), lambda b: (b, 0, 0)),    # x
        const((1, C)), const((1, C)),                          # LN gamma, beta
        const((C, C)), const((1, C)),                          # W1a, b1a (GLU output half)
        const((C, C)), const((1, C)),                          # W1b, b1b (GLU gate half)
        const((K, C)),                                         # depthwise weight (K, C)
        const((1, C)), const((1, C)),                          # BN scale, shift (folded)
        const((C, C)), const((1, C)),                          # W2, b2
    ]

    return pl.pallas_call(
        kernel,
        out_shape=jax.ShapeDtypeStruct((B, T, C), jnp.float32),
        grid=(B // block_b,),
        in_specs=in_specs,
        out_specs=pl.BlockSpec((block_b, T, C), lambda b: (b, 0, 0)),
        scratch_shapes=[pltpu.VMEM((T + K - 1, C), jnp.float32)],
        compiler_params=pltpu.CompilerParams(
            dimension_semantics=("parallel",),
            vmem_limit_bytes=32 * 1024 * 1024),
    )(x, params["ln_gamma"], params["ln_beta"],
      params["w1a"], params["b1a"], params["w1b"], params["b1b"],
      params["w_dw"], params["bn_scale"], params["bn_shift"],
      params["w2"], params["b2"])


# ---------------------------------------------------------------------------
# Pure-JAX reference (depthwise conv via lax.conv_general_dilated)
# ---------------------------------------------------------------------------

def reference_forward(x, p, *, kernel_size):
    B, T, C = x.shape
    K = kernel_size
    pad = (K - 1) // 2
    eps = 1e-5

    mean = x.mean(-1, keepdims=True)
    var = ((x - mean) ** 2).mean(-1, keepdims=True)
    xn = (x - mean) / jnp.sqrt(var + eps) * p["ln_gamma"][0] + p["ln_beta"][0]

    h_out = xn @ p["w1a"] + p["b1a"][0]
    h_gate = xn @ p["w1b"] + p["b1b"][0]
    glu = h_out * jax.nn.sigmoid(h_gate)                         # (B, T, C)

    dw = lax.conv_general_dilated(
        jnp.transpose(glu, (0, 2, 1)),                           # (B, C, T)
        jnp.transpose(p["w_dw"], (1, 0))[:, None, :],            # (C, 1, K)
        window_strides=(1,), padding=[(pad, pad)],
        dimension_numbers=("NCH", "OIH", "NCH"),
        feature_group_count=C)
    dw = jnp.transpose(dw, (0, 2, 1))                            # (B, T, C)

    z = dw * p["bn_scale"][0] + p["bn_shift"][0]
    sw = z * jax.nn.sigmoid(z)
    return sw @ p["w2"] + p["b2"][0]


# ---------------------------------------------------------------------------

if __name__ == "__main__":
    B, T, C, K = 2, 16, 32, 31

    key = jax.random.PRNGKey(0)
    ks = jax.random.split(key, 14)

    def nrm(k, shape, scale=0.1):
        return (scale * jax.random.normal(k, shape)).astype(jnp.float32)

    # Eval-mode BatchNorm1d: running stats + affine folded into scale/shift.
    bn_gamma = 1.0 + nrm(ks[8], (1, C))
    bn_beta = nrm(ks[9], (1, C))
    bn_mean = nrm(ks[10], (1, C))
    bn_var = (1.0 + nrm(ks[11], (1, C))) ** 2
    bn_scale = (bn_gamma / jnp.sqrt(bn_var + 1e-5)).astype(jnp.float32)
    bn_shift = (bn_beta - bn_mean * bn_scale).astype(jnp.float32)

    params = {
        "ln_gamma": 1.0 + nrm(ks[0], (1, C)),
        "ln_beta": nrm(ks[1], (1, C)),
        # PyTorch pointwise-1 weight (2C, C, 1) split into the GLU "output"
        # half (first C out channels) and "gate" half (last C), stored
        # transposed as (C_in, C_out) for channel-last matmuls.
        "w1a": nrm(ks[2], (C, C)), "b1a": nrm(ks[3], (1, C), 0.02),
        "w1b": nrm(ks[4], (C, C)), "b1b": nrm(ks[5], (1, C), 0.02),
        # PyTorch depthwise weight (C, 1, K) stored as (K, C).
        "w_dw": nrm(ks[6], (K, C)),
        "bn_scale": bn_scale, "bn_shift": bn_shift,
        # PyTorch pointwise-2 weight (C, C, 1) stored transposed (C_in, C_out).
        "w2": nrm(ks[7], (C, C)), "b2": nrm(ks[12], (1, C), 0.02),
    }

    x = nrm(ks[13], (B, T, C), 1.0)

    out = conformer_conv_module(x, params, kernel_size=K, block_b=B)
    out = jax.block_until_ready(out)
    assert out.shape == (B, T, C)

    ref = reference_forward(x, params, kernel_size=K)
    np.testing.assert_allclose(np.asarray(out), np.asarray(ref),
                               rtol=2e-3, atol=2e-3)

    print("KERNEL_OK")
</pallas_src>

<mosaic_0001>
module attributes {stable_mosaic.version = 11 : i64} {
  func.func @_conformer_conv_kernel(%arg0: i32, %arg1: memref<2x16x32xf32, #tpu.memory_space<vmem>>, %arg2: memref<1x32xf32, #tpu.memory_space<vmem>>, %arg3: memref<1x32xf32, #tpu.memory_space<vmem>>, %arg4: memref<32x32xf32, #tpu.memory_space<vmem>>, %arg5: memref<1x32xf32, #tpu.memory_space<vmem>>, %arg6: memref<32x32xf32, #tpu.memory_space<vmem>>, %arg7: memref<1x32xf32, #tpu.memory_space<vmem>>, %arg8: memref<31x32xf32, #tpu.memory_space<vmem>>, %arg9: memref<1x32xf32, #tpu.memory_space<vmem>>, %arg10: memref<1x32xf32, #tpu.memory_space<vmem>>, %arg11: memref<32x32xf32, #tpu.memory_space<vmem>>, %arg12: memref<1x32xf32, #tpu.memory_space<vmem>>, %arg13: memref<2x16x32xf32, #tpu.memory_space<vmem>>, %arg14: memref<46x32xf32, #tpu.memory_space<vmem>>) attributes {dimension_semantics = [#tpu.dimension_semantics<parallel>], iteration_bounds = array<i64: 1>, scalar_prefetch = 0 : i64, scratch_operands = 1 : i64, tpu.core_type = #tpu.core_type<tc>, window_params = [{transform_indices = @transform_0, window_bounds = array<i64: 2, 16, 32>}, {pipeline_mode = #tpu.pipeline_mode<synchronous>, transform_indices = @transform_1, window_bounds = array<i64: 1, 32>}, {pipeline_mode = #tpu.pipeline_mode<synchronous>, transform_indices = @transform_2, window_bounds = array<i64: 1, 32>}, {pipeline_mode = #tpu.pipeline_mode<synchronous>, transform_indices = @transform_3, window_bounds = array<i64: 32, 32>}, {pipeline_mode = #tpu.pipeline_mode<synchronous>, transform_indices = @transform_4, window_bounds = array<i64: 1, 32>}, {pipeline_mode = #tpu.pipeline_mode<synchronous>, transform_indices = @transform_5, window_bounds = array<i64: 32, 32>}, {pipeline_mode = #tpu.pipeline_mode<synchronous>, transform_indices = @transform_6, window_bounds = array<i64: 1, 32>}, {pipeline_mode = #tpu.pipeline_mode<synchronous>, transform_indices = @transform_7, window_bounds = array<i64: 31, 32>}, {pipeline_mode = #tpu.pipeline_mode<synchronous>, transform_indices = @transform_8, window_bounds = array<i64: 1, 32>}, {pipeline_mode = #tpu.pipeline_mode<synchronous>, transform_indices = @transform_9, window_bounds = array<i64: 1, 32>}, {pipeline_mode = #tpu.pipeline_mode<synchronous>, transform_indices = @transform_10, window_bounds = array<i64: 32, 32>}, {pipeline_mode = #tpu.pipeline_mode<synchronous>, transform_indices = @transform_11, window_bounds = array<i64: 1, 32>}, {transform_indices = @transform_12, window_bounds = array<i64: 2, 16, 32>}]} {
    %c0 = arith.constant 0 : index
    %c0_0 = arith.constant 0 : index
    %0 = vector.load %arg2[%c0, %c0_0] : memref<1x32xf32, #tpu.memory_space<vmem>>, vector<1x32xf32>
    %c0_1 = arith.constant 0 : index
    %c0_2 = arith.constant 0 : index
    %1 = vector.load %arg3[%c0_1, %c0_2] : memref<1x32xf32, #tpu.memory_space<vmem>>, vector<1x32xf32>
    %c0_3 = arith.constant 0 : index
    %c0_4 = arith.constant 0 : index
    %2 = vector.load %arg4[%c0_3, %c0_4] : memref<32x32xf32, #tpu.memory_space<vmem>>, vector<32x32xf32>
    %c0_5 = arith.constant 0 : index
    %c0_6 = arith.constant 0 : index
    %3 = vector.load %arg5[%c0_5, %c0_6] : memref<1x32xf32, #tpu.memory_space<vmem>>, vector<1x32xf32>
    %c0_7 = arith.constant 0 : index
    %c0_8 = arith.constant 0 : index
    %4 = vector.load %arg6[%c0_7, %c0_8] : memref<32x32xf32, #tpu.memory_space<vmem>>, vector<32x32xf32>
    %c0_9 = arith.constant 0 : index
    %c0_10 = arith.constant 0 : index
    %5 = vector.load %arg7[%c0_9, %c0_10] : memref<1x32xf32, #tpu.memory_space<vmem>>, vector<1x32xf32>
    %c0_11 = arith.constant 0 : index
    %c0_12 = arith.constant 0 : index
    %6 = vector.load %arg9[%c0_11, %c0_12] : memref<1x32xf32, #tpu.memory_space<vmem>>, vector<1x32xf32>
    %c0_13 = arith.constant 0 : index
    %c0_14 = arith.constant 0 : index
    %7 = vector.load %arg10[%c0_13, %c0_14] : memref<1x32xf32, #tpu.memory_space<vmem>>, vector<1x32xf32>
    %c0_15 = arith.constant 0 : index
    %c0_16 = arith.constant 0 : index
    %8 = vector.load %arg11[%c0_15, %c0_16] : memref<32x32xf32, #tpu.memory_space<vmem>>, vector<32x32xf32>
    %c0_17 = arith.constant 0 : index
    %c0_18 = arith.constant 0 : index
    %9 = vector.load %arg12[%c0_17, %c0_18] : memref<1x32xf32, #tpu.memory_space<vmem>>, vector<1x32xf32>
    %cst = arith.constant 0.000000e+00 : f32
    %10 = vector.broadcast %cst : f32 to vector<46x32xf32>
    %c0_19 = arith.constant 0 : index
    %c0_20 = arith.constant 0 : index
    %11 = vector.load %arg14[%c0_19, %c0_20] : memref<46x32xf32, #tpu.memory_space<vmem>>, vector<46x32xf32>
    tpu.vector_store %arg14[%c0_19, %c0_20], %10 {strides = array<i32>} : memref<46x32xf32, #tpu.memory_space<vmem>>, vector<46x32xf32>,
    %c0_21 = arith.constant 0 : index
    %c0_22 = arith.constant 0 : index
    %c0_23 = arith.constant 0 : index
    %12 = vector.load %arg1[%c0_21, %c0_22, %c0_23] : memref<2x16x32xf32, #tpu.memory_space<vmem>>, vector<1x16x32xf32>
    %13 = vector.shape_cast %12 : vector<1x16x32xf32> to vector<16x32xf32>
    %cst_24 = arith.constant dense<0.000000e+00> : vector<16xf32>
    %14 = vector.multi_reduction <add>, %13, %cst_24 [1] : vector<16x32xf32> to vector<16xf32>
    %15 = vector.shape_cast %14 : vector<16xf32> to vector<16x1xf32>
    %cst_25 = arith.constant 3.200000e+01 : f32
    %16 = vector.broadcast %cst_25 : f32 to vector<16x1xf32>
    %17 = arith.divf %15, %16 : vector<16x1xf32>
    %18 = vector.broadcast %17 : vector<16x1xf32> to vector<16x32xf32>
    %19 = arith.subf %13, %18 : vector<16x32xf32>
    %20 = arith.mulf %19, %19 : vector<16x32xf32>
    %cst_26 = arith.constant dense<0.000000e+00> : vector<16xf32>
    %21 = vector.multi_reduction <add>, %20, %cst_26 [1] : vector<16x32xf32> to vector<16xf32>
    %22 = vector.shape_cast %21 : vector<16xf32> to vector<16x1xf32>
    %cst_27 = arith.constant 3.200000e+01 : f32
    %23 = vector.broadcast %cst_27 : f32 to vector<16x1xf32>
    %24 = arith.divf %22, %23 : vector<16x1xf32>
    %25 = vector.broadcast %17 : vector<16x1xf32> to vector<16x32xf32>
    %26 = arith.subf %13, %25 : vector<16x32xf32>
    %cst_28 = arith.constant 9.99999974E-6 : f32
    %27 = vector.broadcast %cst_28 : f32 to vector<16x1xf32>
    %28 = arith.addf %24, %27 : vector<16x1xf32>
    %29 = math.rsqrt %28 : vector<16x1xf32>
    %30 = vector.broadcast %29 : vector<16x1xf32> to vector<16x32xf32>
    %31 = arith.mulf %26, %30 : vector<16x32xf32>
    %32 = vector.broadcast %0 : vector<1x32xf32> to vector<16x32xf32>
    %33 = arith.mulf %31, %32 : vector<16x32xf32>
    %34 = vector.broadcast %1 : vector<1x32xf32> to vector<16x32xf32>
    %35 = arith.addf %33, %34 : vector<16x32xf32>
    %cst_29 = arith.constant dense<0.000000e+00> : vector<16x32xf32>
    %36 = tpu.matmul %35, %2, %cst_29 {dimension_numbers = #tpu.dot_dimension_numbers<[1], [0], [0], [1], [0, 0, 1, 1], [], []>} : vector<16x32xf32>, vector<32x32xf32>, vector<16x32xf32> -> vector<16x32xf32>
    %37 = vector.broadcast %3 : vector<1x32xf32> to vector<16x32xf32>
    %38 = arith.addf %36, %37 : vector<16x32xf32>
    %cst_30 = arith.constant dense<0.000000e+00> : vector<16x32xf32>
    %39 = tpu.matmul %35, %4, %cst_30 {dimension_numbers = #tpu.dot_dimension_numbers<[1], [0], [0], [1], [0, 0, 1, 1], [], []>} : vector<16x32xf32>, vector<32x32xf32>, vector<16x32xf32> -> vector<16x32xf32>
    %40 = vector.broadcast %5 : vector<1x32xf32> to vector<16x32xf32>
    %41 = arith.addf %39, %40 : vector<16x32xf32>
    %42 = arith.negf %41 : vector<16x32xf32>
    %43 = math.exp %42 : vector<16x32xf32>
    %cst_31 = arith.constant 1.000000e+00 : f32
    %44 = vector.broadcast %cst_31 : f32 to vector<16x32xf32>
    %45 = arith.addf %44, %43 : vector<16x32xf32>
    %46 = arith.divf %44, %45 : vector<16x32xf32>
    %47 = arith.mulf %38, %46 : vector<16x32xf32>
    %c15 = arith.constant 15 : index
    %c0_32 = arith.constant 0 : index
    %48 = vector.load %arg14[%c15, %c0_32] : memref<46x32xf32, #tpu.memory_space<vmem>>, vector<16x32xf32>
    tpu.vector_store %arg14[%c15, %c0_32], %47 {strides = array<i32>} : memref<46x32xf32, #tpu.memory_space<vmem>>, vector<16x32xf32>,
    %cst_33 = arith.constant 0.000000e+00 : f32
    %49 = vector.broadcast %cst_33 : f32 to vector<16x32xf32>
    %c0_34 = arith.constant 0 : index
    %c0_35 = arith.constant 0 : index
    %50 = vector.load %arg14[%c0_34, %c0_35] : memref<46x32xf32, #tpu.memory_space<vmem>>, vector<16x32xf32>
    %c0_36 = arith.constant 0 : index
    %c0_37 = arith.constant 0 : index
    %51 = vector.load %arg8[%c0_36, %c0_37] : memref<31x32xf32, #tpu.memory_space<vmem>>, vector<1x32xf32>
    %52 = vector.broadcast %51 : vector<1x32xf32> to vector<16x32xf32>
    %53 = arith.mulf %50, %52 : vector<16x32xf32>
    %54 = arith.addf %49, %53 : vector<16x32xf32>
    %c1 = arith.constant 1 : index
    %c0_38 = arith.constant 0 : index
    %55 = vector.load %arg14[%c1, %c0_38] : memref<46x32xf32, #tpu.memory_space<vmem>>, vector<16x32xf32>
    %c1_39 = arith.constant 1 : index
    %c0_40 = arith.constant 0 : index
    %56 = vector.load %arg8[%c1_39, %c0_40] : memref<31x32xf32, #tpu.memory_space<vmem>>, vector<1x32xf32>
    %57 = vector.broadcast %56 : vector<1x32xf32> to vector<16x32xf32>
    %58 = arith.mulf %55, %57 : vector<16x32xf32>
    %59 = arith.addf %54, %58 : vector<16x32xf32>
    %c2 = arith.constant 2 : index
    %c0_41 = arith.constant 0 : index
    %60 = vector.load %arg14[%c2, %c0_41] : memref<46x32xf32, #tpu.memory_space<vmem>>, vector<16x32xf32>
    %c2_42 = arith.constant 2 : index
    %c0_43 = arith.constant 0 : index
    %61 = vector.load %arg8[%c2_42, %c0_43] : memref<31x32xf32, #tpu.memory_space<vmem>>, vector<1x32xf32>
    %62 = vector.broadcast %61 : vector<1x32xf32> to vector<16x32xf32>
    %63 = arith.mulf %60, %62 : vector<16x32xf32>
    %64 = arith.addf %59, %63 : vector<16x32xf32>
    %c3 = arith.constant 3 : index
    %c0_44 = arith.constant 0 : index
    %65 = vector.load %arg14[%c3, %c0_44] : memref<46x32xf32, #tpu.memory_space<vmem>>, vector<16x32xf32>
    %c3_45 = arith.constant 3 : index
    %c0_46 = arith.constant 0 : index
    %66 = vector.load %arg8[%c3_45, %c0_46] : memref<31x32xf32, #tpu.memory_space<vmem>>, vector<1x32xf32>
    %67 = vector.broadcast %66 : vector<1x32xf32> to vector<16x32xf32>
    %68 = arith.mulf %65, %67 : vector<16x32xf32>
    %69 = arith.addf %64, %68 : vector<16x32xf32>
    %c4 = arith.constant 4 : index
    %c0_47 = arith.constant 0 : index
    %70 = vector.load %arg14[%c4, %c0_47] : memref<46x32xf32, #tpu.memory_space<vmem>>, vector<16x32xf32>
    %c4_48 = arith.constant 4 : index
    %c0_49 = arith.constant 0 : index
    %71 = vector.load %arg8[%c4_48, %c0_49] : memref<31x32xf32, #tpu.memory_space<vmem>>, vector<1x32xf32>
    %72 = vector.broadcast %71 : vector<1x32xf32> to vector<16x32xf32>
    %73 = arith.mulf %70, %72 : vector<16x32xf32>
    %74 = arith.addf %69, %73 : vector<16x32xf32>
    %c5 = arith.constant 5 : index
    %c0_50 = arith.constant 0 : index
    %75 = vector.load %arg14[%c5, %c0_50] : memref<46x32xf32, #tpu.memory_space<vmem>>, vector<16x32xf32>
    %c5_51 = arith.constant 5 : index
    %c0_52 = arith.constant 0 : index
    %76 = vector.load %arg8[%c5_51, %c0_52] : memref<31x32xf32, #tpu.memory_space<vmem>>, vector<1x32xf32>
    %77 = vector.broadcast %76 : vector<1x32xf32> to vector<16x32xf32>
    %78 = arith.mulf %75, %77 : vector<16x32xf32>
    %79 = arith.addf %74, %78 : vector<16x32xf32>
    %c6 = arith.constant 6 : index
    %c0_53 = arith.constant 0 : index
    %80 = vector.load %arg14[%c6, %c0_53] : memref<46x32xf32, #tpu.memory_space<vmem>>, vector<16x32xf32>
    %c6_54 = arith.constant 6 : index
    %c0_55 = arith.constant 0 : index
    %81 = vector.load %arg8[%c6_54, %c0_55] : memref<31x32xf32, #tpu.memory_space<vmem>>, vector<1x32xf32>
    %82 = vector.broadcast %81 : vector<1x32xf32> to vector<16x32xf32>
    %83 = arith.mulf %80, %82 : vector<16x32xf32>
    %84 = arith.addf %79, %83 : vector<16x32xf32>
    %c7 = arith.constant 7 : index
    %c0_56 = arith.constant 0 : index
    %85 = vector.load %arg14[%c7, %c0_56] : memref<46x32xf32, #tpu.memory_space<vmem>>, vector<16x32xf32>
    %c7_57 = arith.constant 7 : index
    %c0_58 = arith.constant 0 : index
    %86 = vector.load %arg8[%c7_57, %c0_58] : memref<31x32xf32, #tpu.memory_space<vmem>>, vector<1x32xf32>
    %87 = vector.broadcast %86 : vector<1x32xf32> to vector<16x32xf32>
    %88 = arith.mulf %85, %87 : vector<16x32xf32>
    %89 = arith.addf %84, %88 : vector<16x32xf32>
    %c8 = arith.constant 8 : index
    %c0_59 = arith.constant 0 : index
    %90 = vector.load %arg14[%c8, %c0_59] : memref<46x32xf32, #tpu.memory_space<vmem>>, vector<16x32xf32>
    %c8_60 = arith.constant 8 : index
    %c0_61 = arith.constant 0 : index
    %91 = vector.load %arg8[%c8_60, %c0_61] : memref<31x32xf32, #tpu.memory_space<vmem>>, vector<1x32xf32>
    %92 = vector.broadcast %91 : vector<1x32xf32> to vector<16x32xf32>
    %93 = arith.mulf %90, %92 : vector<16x32xf32>
    %94 = arith.addf %89, %93 : vector<16x32xf32>
    %c9 = arith.constant 9 : index
    %c0_62 = arith.constant 0 : index
    %95 = vector.load %arg14[%c9, %c0_62] : memref<46x32xf32, #tpu.memory_space<vmem>>, vector<16x32xf32>
    %c9_63 = arith.constant 9 : index
    %c0_64 = arith.constant 0 : index
    %96 = vector.load %arg8[%c9_63, %c0_64] : memref<31x32xf32, #tpu.memory_space<vmem>>, vector<1x32xf32>
    %97 = vector.broadcast %96 : vector<1x32xf32> to vector<16x32xf32>
    %98 = arith.mulf %95, %97 : vector<16x32xf32>
    %99 = arith.addf %94, %98 : vector<16x32xf32>
    %c10 = arith.constant 10 : index
    %c0_65 = arith.constant 0 : index
    %100 = vector.load %arg14[%c10, %c0_65] : memref<46x32xf32, #tpu.memory_space<vmem>>, vector<16x32xf32>
    %c10_66 = arith.constant 10 : index
    %c0_67 = arith.constant 0 : index
    %101 = vector.load %arg8[%c10_66, %c0_67] : memref<31x32xf32, #tpu.memory_space<vmem>>, vector<1x32xf32>
    %102 = vector.broadcast %101 : vector<1x32xf32> to vector<16x32xf32>
    %103 = arith.mulf %100, %102 : vector<16x32xf32>
    %104 = arith.addf %99, %103 : vector<16x32xf32>
    %c11 = arith.constant 11 : index
    %c0_68 = arith.constant 0 : index
    %105 = vector.load %arg14[%c11, %c0_68] : memref<46x32xf32, #tpu.memory_space<vmem>>, vector<16x32xf32>
    %c11_69 = arith.constant 11 : index
    %c0_70 = arith.constant 0 : index
    %106 = vector.load %arg8[%c11_69, %c0_70] : memref<31x32xf32, #tpu.memory_space<vmem>>, vector<1x32xf32>
    %107 = vector.broadcast %106 : vector<1x32xf32> to vector<16x32xf32>
    %108 = arith.mulf %105, %107 : vector<16x32xf32>
    %109 = arith.addf %104, %108 : vector<16x32xf32>
    %c12 = arith.constant 12 : index
    %c0_71 = arith.constant 0 : index
    %110 = vector.load %arg14[%c12, %c0_71] : memref<46x32xf32, #tpu.memory_space<vmem>>, vector<16x32xf32>
    %c12_72 = arith.constant 12 : index
    %c0_73 = arith.constant 0 : index
    %111 = vector.load %arg8[%c12_72, %c0_73] : memref<31x32xf32, #tpu.memory_space<vmem>>, vector<1x32xf32>
    %112 = vector.broadcast %111 : vector<1x32xf32> to vector<16x32xf32>
    %113 = arith.mulf %110, %112 : vector<16x32xf32>
    %114 = arith.addf %109, %113 : vector<16x32xf32>
    %c13 = arith.constant 13 : index
    %c0_74 = arith.constant 0 : index
    %115 = vector.load %arg14[%c13, %c0_74] : memref<46x32xf32, #tpu.memory_space<vmem>>, vector<16x32xf32>
    %c13_75 = arith.constant 13 : index
    %c0_76 = arith.constant 0 : index
    %116 = vector.load %arg8[%c13_75, %c0_76] : memref<31x32xf32, #tpu.memory_space<vmem>>, vector<1x32xf32>
    %117 = vector.broadcast %116 : vector<1x32xf32> to vector<16x32xf32>
    %118 = arith.mulf %115, %117 : vector<16x32xf32>
    %119 = arith.addf %114, %118 : vector<16x32xf32>
    %c14 = arith.constant 14 : index
    %c0_77 = arith.constant 0 : index
    %120 = vector.load %arg14[%c14, %c0_77] : memref<46x32xf32, #tpu.memory_space<vmem>>, vector<16x32xf32>
    %c14_78 = arith.constant 14 : index
    %c0_79 = arith.constant 0 : index
    %121 = vector.load %arg8[%c14_78, %c0_79] : memref<31x32xf32, #tpu.memory_space<vmem>>, vector<1x32xf32>
    %122 = vector.broadcast %121 : vector<1x32xf32> to vector<16x32xf32>
    %123 = arith.mulf %120, %122 : vector<16x32xf32>
    %124 = arith.addf %119, %123 : vector<16x32xf32>
    %c15_80 = arith.constant 15 : index
    %c0_81 = arith.constant 0 : index
    %125 = vector.load %arg14[%c15_80, %c0_81] : memref<46x32xf32, #tpu.memory_space<vmem>>, vector<16x32xf32>
    %c15_82 = arith.constant 15 : index
    %c0_83 = arith.constant 0 : index
    %126 = vector.load %arg8[%c15_82, %c0_83] : memref<31x32xf32, #tpu.memory_space<vmem>>, vector<1x32xf32>
    %127 = vector.broadcast %126 : vector<1x32xf32> to vector<16x32xf32>
    %128 = arith.mulf %125, %127 : vector<16x32xf32>
    %129 = arith.addf %124, %128 : vector<16x32xf32>
    %c16 = arith.constant 16 : index
    %c0_84 = arith.constant 0 : index
    %130 = vector.load %arg14[%c16, %c0_84] : memref<46x32xf32, #tpu.memory_space<vmem>>, vector<16x32xf32>
    %c16_85 = arith.constant 16 : index
    %c0_86 = arith.constant 0 : index
    %131 = vector.load %arg8[%c16_85, %c0_86] : memref<31x32xf32, #tpu.memory_space<vmem>>, vector<1x32xf32>
    %132 = vector.broadcast %131 : vector<1x32xf32> to vector<16x32xf32>
    %133 = arith.mulf %130, %132 : vector<16x32xf32>
    %134 = arith.addf %129, %133 : vector<16x32xf32>
    %c17 = arith.constant 17 : index
    %c0_87 = arith.constant 0 : index
    %135 = vector.load %arg14[%c17, %c0_87] : memref<46x32xf32, #tpu.memory_space<vmem>>, vector<16x32xf32>
    %c17_88 = arith.constant 17 : index
    %c0_89 = arith.constant 0 : index
    %136 = vector.load %arg8[%c17_88, %c0_89] : memref<31x32xf32, #tpu.memory_space<vmem>>, vector<1x32xf32>
    %137 = vector.broadcast %136 : vector<1x32xf32> to vector<16x32xf32>
    %138 = arith.mulf %135, %137 : vector<16x32xf32>
    %139 = arith.addf %134, %138 : vector<16x32xf32>
    %c18 = arith.constant 18 : index
    %c0_90 = arith.constant 0 : index
    %140 = vector.load %arg14[%c18, %c0_90] : memref<46x32xf32, #tpu.memory_space<vmem>>, vector<16x32xf32>
    %c18_91 = arith.constant 18 : index
    %c0_92 = arith.constant 0 : index
    %141 = vector.load %arg8[%c18_91, %c0_92] : memref<31x32xf32, #tpu.memory_space<vmem>>, vector<1x32xf32>
    %142 = vector.broadcast %141 : vector<1x32xf32> to vector<16x32xf32>
    %143 = arith.mulf %140, %142 : vector<16x32xf32>
    %144 = arith.addf %139, %143 : vector<16x32xf32>
    %c19 = arith.constant 19 : index
    %c0_93 = arith.constant 0 : index
    %145 = vector.load %arg14[%c19, %c0_93] : memref<46x32xf32, #tpu.memory_space<vmem>>, vector<16x32xf32>
    %c19_94 = arith.constant 19 : index
    %c0_95 = arith.constant 0 : index
    %146 = vector.load %arg8[%c19_94, %c0_95] : memref<31x32xf32, #tpu.memory_space<vmem>>, vector<1x32xf32>
    %147 = vector.broadcast %146 : vector<1x32xf32> to vector<16x32xf32>
    %148 = arith.mulf %145, %147 : vector<16x32xf32>
    %149 = arith.addf %144, %148 : vector<16x32xf32>
    %c20 = arith.constant 20 : index
    %c0_96 = arith.constant 0 : index
    %150 = vector.load %arg14[%c20, %c0_96] : memref<46x32xf32, #tpu.memory_space<vmem>>, vector<16x32xf32>
    %c20_97 = arith.constant 20 : index
    %c0_98 = arith.constant 0 : index
    %151 = vector.load %arg8[%c20_97, %c0_98] : memref<31x32xf32, #tpu.memory_space<vmem>>, vector<1x32xf32>
    %152 = vector.broadcast %151 : vector<1x32xf32> to vector<16x32xf32>
    %153 = arith.mulf %150, %152 : vector<16x32xf32>
    %154 = arith.addf %149, %153 : vector<16x32xf32>
    %c21 = arith.constant 21 : index
    %c0_99 = arith.constant 0 : index
    %155 = vector.load %arg14[%c21, %c0_99] : memref<46x32xf32, #tpu.memory_space<vmem>>, vector<16x32xf32>
    %c21_100 = arith.constant 21 : index
    %c0_101 = arith.constant 0 : index
    %156 = vector.load %arg8[%c21_100, %c0_101] : memref<31x32xf32, #tpu.memory_space<vmem>>, vector<1x32xf32>
    %157 = vector.broadcast %156 : vector<1x32xf32> to vector<16x32xf32>
    %158 = arith.mulf %155, %157 : vector<16x32xf32>
    %159 = arith.addf %154, %158 : vector<16x32xf32>
    %c22 = arith.constant 22 : index
    %c0_102 = arith.constant 0 : index
    %160 = vector.load %arg14[%c22, %c0_102] : memref<46x32xf32, #tpu.memory_space<vmem>>, vector<16x32xf32>
    %c22_103 = arith.constant 22 : index
    %c0_104 = arith.constant 0 : index
    %161 = vector.load %arg8[%c22_103, %c0_104] : memref<31x32xf32, #tpu.memory_space<vmem>>, vector<1x32xf32>
    %162 = vector.broadcast %161 : vector<1x32xf32> to vector<16x32xf32>
    %163 = arith.mulf %160, %162 : vector<16x32xf32>
    %164 = arith.addf %159, %163 : vector<16x32xf32>
    %c23 = arith.constant 23 : index
    %c0_105 = arith.constant 0 : index
    %165 = vector.load %arg14[%c23, %c0_105] : memref<46x32xf32, #tpu.memory_space<vmem>>, vector<16x32xf32>
    %c23_106 = arith.constant 23 : index
    %c0_107 = arith.constant 0 : index
    %166 = vector.load %arg8[%c23_106, %c0_107] : memref<31x32xf32, #tpu.memory_space<vmem>>, vector<1x32xf32>
    %167 = vector.broadcast %166 : vector<1x32xf32> to vector<16x32xf32>
    %168 = arith.mulf %165, %167 : vector<16x32xf32>
    %169 = arith.addf %164, %168 : vector<16x32xf32>
    %c24 = arith.constant 24 : index
    %c0_108 = arith.constant 0 : index
    %170 = vector.load %arg14[%c24, %c0_108] : memref<46x32xf32, #tpu.memory_space<vmem>>, vector<16x32xf32>
    %c24_109 = arith.constant 24 : index
    %c0_110 = arith.constant 0 : index
    %171 = vector.load %arg8[%c24_109, %c0_110] : memref<31x32xf32, #tpu.memory_space<vmem>>, vector<1x32xf32>
    %172 = vector.broadcast %171 : vector<1x32xf32> to vector<16x32xf32>
    %173 = arith.mulf %170, %172 : vector<16x32xf32>
    %174 = arith.addf %169, %173 : vector<16x32xf32>
    %c25 = arith.constant 25 : index
    %c0_111 = arith.constant 0 : index
    %175 = vector.load %arg14[%c25, %c0_111] : memref<46x32xf32, #tpu.memory_space<vmem>>, vector<16x32xf32>
    %c25_112 = arith.constant 25 : index
    %c0_113 = arith.constant 0 : index
    %176 = vector.load %arg8[%c25_112, %c0_113] : memref<31x32xf32, #tpu.memory_space<vmem>>, vector<1x32xf32>
    %177 = vector.broadcast %176 : vector<1x32xf32> to vector<16x32xf32>
    %178 = arith.mulf %175, %177 : vector<16x32xf32>
    %179 = arith.addf %174, %178 : vector<16x32xf32>
    %c26 = arith.constant 26 : index
    %c0_114 = arith.constant 0 : index
    %180 = vector.load %arg14[%c26, %c0_114] : memref<46x32xf32, #tpu.memory_space<vmem>>, vector<16x32xf32>
    %c26_115 = arith.constant 26 : index
    %c0_116 = arith.constant 0 : index
    %181 = vector.load %arg8[%c26_115, %c0_116] : memref<31x32xf32, #tpu.memory_space<vmem>>, vector<1x32xf32>
    %182 = vector.broadcast %181 : vector<1x32xf32> to vector<16x32xf32>
    %183 = arith.mulf %180, %182 : vector<16x32xf32>
    %184 = arith.addf %179, %183 : vector<16x32xf32>
    %c27 = arith.constant 27 : index
    %c0_117 = arith.constant 0 : index
    %185 = vector.load %arg14[%c27, %c0_117] : memref<46x32xf32, #tpu.memory_space<vmem>>, vector<16x32xf32>
    %c27_118 = arith.constant 27 : index
    %c0_119 = arith.constant 0 : index
    %186 = vector.load %arg8[%c27_118, %c0_119] : memref<31x32xf32, #tpu.memory_space<vmem>>, vector<1x32xf32>
    %187 = vector.broadcast %186 : vector<1x32xf32> to vector<16x32xf32>
    %188 = arith.mulf %185, %187 : vector<16x32xf32>
    %189 = arith.addf %184, %188 : vector<16x32xf32>
    %c28 = arith.constant 28 : index
    %c0_120 = arith.constant 0 : index
    %190 = vector.load %arg14[%c28, %c0_120] : memref<46x32xf32, #tpu.memory_space<vmem>>, vector<16x32xf32>
    %c28_121 = arith.constant 28 : index
    %c0_122 = arith.constant 0 : index
    %191 = vector.load %arg8[%c28_121, %c0_122] : memref<31x32xf32, #tpu.memory_space<vmem>>, vector<1x32xf32>
    %192 = vector.broadcast %191 : vector<1x32xf32> to vector<16x32xf32>
    %193 = arith.mulf %190, %192 : vector<16x32xf32>
    %194 = arith.addf %189, %193 : vector<16x32xf32>
    %c29 = arith.constant 29 : index
    %c0_123 = arith.constant 0 : index
    %195 = vector.load %arg14[%c29, %c0_123] : memref<46x32xf32, #tpu.memory_space<vmem>>, vector<16x32xf32>
    %c29_124 = arith.constant 29 : index
    %c0_125 = arith.constant 0 : index
    %196 = vector.load %arg8[%c29_124, %c0_125] : memref<31x32xf32, #tpu.memory_space<vmem>>, vector<1x32xf32>
    %197 = vector.broadcast %196 : vector<1x32xf32> to vector<16x32xf32>
    %198 = arith.mulf %195, %197 : vector<16x32xf32>
    %199 = arith.addf %194, %198 : vector<16x32xf32>
    %c30 = arith.constant 30 : index
    %c0_126 = arith.constant 0 : index
    %200 = vector.load %arg14[%c30, %c0_126] : memref<46x32xf32, #tpu.memory_space<vmem>>, vector<16x32xf32>
    %c30_127 = arith.constant 30 : index
    %c0_128 = arith.constant 0 : index
    %201 = vector.load %arg8[%c30_127, %c0_128] : memref<31x32xf32, #tpu.memory_space<vmem>>, vector<1x32xf32>
    %202 = vector.broadcast %201 : vector<1x32xf32> to vector<16x32xf32>
    %203 = arith.mulf %200, %202 : vector<16x32xf32>
    %204 = arith.addf %199, %203 : vector<16x32xf32>
    %205 = vector.broadcast %6 : vector<1x32xf32> to vector<16x32xf32>
    %206 = arith.mulf %204, %205 : vector<16x32xf32>
    %207 = vector.broadcast %7 : vector<1x32xf32> to vector<16x32xf32>
    %208 = arith.addf %206, %207 : vector<16x32xf32>
    %209 = arith.negf %208 : vector<16x32xf32>
    %210 = math.exp %209 : vector<16x32xf32>
    %cst_129 = arith.constant 1.000000e+00 : f32
    %211 = vector.broadcast %cst_129 : f32 to vector<16x32xf32>
    %212 = arith.addf %211, %210 : vector<16x32xf32>
    %213 = arith.divf %211, %212 : vector<16x32xf32>
    %214 = arith.mulf %208, %213 : vector<16x32xf32>
    %cst_130 = arith.constant dense<0.000000e+00> : vector<16x32xf32>
    %215 = tpu.matmul %214, %8, %cst_130 {dimension_numbers = #tpu.dot_dimension_numbers<[1], [0], [0], [1], [0, 0, 1, 1], [], []>} : vector<16x32xf32>, vector<32x32xf32>, vector<16x32xf32> -> vector<16x32xf32>
    %216 = vector.broadcast %9 : vector<1x32xf32> to vector<16x32xf32>
    %217 = arith.addf %215, %216 : vector<16x32xf32>
    %c0_131 = arith.constant 0 : index
    %c0_132 = arith.constant 0 : index
    %c0_133 = arith.constant 0 : index
    %218 = vector.load %arg13[%c0_131, %c0_132, %c0_133] : memref<2x16x32xf32, #tpu.memory_space<vmem>>, vector<1x16x32xf32>
    %219 = vector.shape_cast %218 : vector<1x16x32xf32> to vector<16x32xf32>
    %220 = vector.shape_cast %217 : vector<16x32xf32> to vector<1x16x32xf32>
    tpu.vector_store %arg13[%c0_131, %c0_132, %c0_133], %220 {strides = array<i32>} : memref<2x16x32xf32, #tpu.memory_space<vmem>>, vector<1x16x32xf32>,
    %c1_134 = arith.constant 1 : index
    %c0_135 = arith.constant 0 : index
    %c0_136 = arith.constant 0 : index
    %221 = vector.load %arg1[%c1_134, %c0_135, %c0_136] : memref<2x16x32xf32, #tpu.memory_space<vmem>>, vector<1x16x32xf32>
    %222 = vector.shape_cast %221 : vector<1x16x32xf32> to vector<16x32xf32>
    %cst_137 = arith.constant dense<0.000000e+00> : vector<16xf32>
    %223 = vector.multi_reduction <add>, %222, %cst_137 [1] : vector<16x32xf32> to vector<16xf32>
    %224 = vector.shape_cast %223 : vector<16xf32> to vector<16x1xf32>
    %cst_138 = arith.constant 3.200000e+01 : f32
    %225 = vector.broadcast %cst_138 : f32 to vector<16x1xf32>
    %226 = arith.divf %224, %225 : vector<16x1xf32>
    %227 = vector.broadcast %226 : vector<16x1xf32> to vector<16x32xf32>
    %228 = arith.subf %222, %227 : vector<16x32xf32>
    %229 = arith.mulf %228, %228 : vector<16x32xf32>
    %cst_139 = arith.constant dense<0.000000e+00> : vector<16xf32>
    %230 = vector.multi_reduction <add>, %229, %cst_139 [1] : vector<16x32xf32> to vector<16xf32>
    %231 = vector.shape_cast %230 : vector<16xf32> to vector<16x1xf32>
    %cst_140 = arith.constant 3.200000e+01 : f32
    %232 = vector.broadcast %cst_140 : f32 to vector<16x1xf32>
    %233 = arith.divf %231, %232 : vector<16x1xf32>
    %234 = vector.broadcast %226 : vector<16x1xf32> to vector<16x32xf32>
    %235 = arith.subf %222, %234 : vector<16x32xf32>
    %cst_141 = arith.constant 9.99999974E-6 : f32
    %236 = vector.broadcast %cst_141 : f32 to vector<16x1xf32>
    %237 = arith.addf %233, %236 : vector<16x1xf32>
    %238 = math.rsqrt %237 : vector<16x1xf32>
    %239 = vector.broadcast %238 : vector<16x1xf32> to vector<16x32xf32>
    %240 = arith.mulf %235, %239 : vector<16x32xf32>
    %241 = vector.broadcast %0 : vector<1x32xf32> to vector<16x32xf32>
    %242 = arith.mulf %240, %241 : vector<16x32xf32>
    %243 = vector.broadcast %1 : vector<1x32xf32> to vector<16x32xf32>
    %244 = arith.addf %242, %243 : vector<16x32xf32>
    %cst_142 = arith.constant dense<0.000000e+00> : vector<16x32xf32>
    %245 = tpu.matmul %244, %2, %cst_142 {dimension_numbers = #tpu.dot_dimension_numbers<[1], [0], [0], [1], [0, 0, 1, 1], [], []>} : vector<16x32xf32>, vector<32x32xf32>, vector<16x32xf32> -> vector<16x32xf32>
    %246 = vector.broadcast %3 : vector<1x32xf32> to vector<16x32xf32>
    %247 = arith.addf %245, %246 : vector<16x32xf32>
    %cst_143 = arith.constant dense<0.000000e+00> : vector<16x32xf32>
    %248 = tpu.matmul %244, %4, %cst_143 {dimension_numbers = #tpu.dot_dimension_numbers<[1], [0], [0], [1], [0, 0, 1, 1], [], []>} : vector<16x32xf32>, vector<32x32xf32>, vector<16x32xf32> -> vector<16x32xf32>
    %249 = vector.broadcast %5 : vector<1x32xf32> to vector<16x32xf32>
    %250 = arith.addf %248, %249 : vector<16x32xf32>
    %251 = arith.negf %250 : vector<16x32xf32>
    %252 = math.exp %251 : vector<16x32xf32>
    %cst_144 = arith.constant 1.000000e+00 : f32
    %253 = vector.broadcast %cst_144 : f32 to vector<16x32xf32>
    %254 = arith.addf %253, %252 : vector<16x32xf32>
    %255 = arith.divf %253, %254 : vector<16x32xf32>
    %256 = arith.mulf %247, %255 : vector<16x32xf32>
    %c15_145 = arith.constant 15 : index
    %c0_146 = arith.constant 0 : index
    %257 = vector.load %arg14[%c15_145, %c0_146] : memref<46x32xf32, #tpu.memory_space<vmem>>, vector<16x32xf32>
    tpu.vector_store %arg14[%c15_145, %c0_146], %256 {strides = array<i32>} : memref<46x32xf32, #tpu.memory_space<vmem>>, vector<16x32xf32>,
    %cst_147 = arith.constant 0.000000e+00 : f32
    %258 = vector.broadcast %cst_147 : f32 to vector<16x32xf32>
    %c0_148 = arith.constant 0 : index
    %c0_149 = arith.constant 0 : index
    %259 = vector.load %arg14[%c0_148, %c0_149] : memref<46x32xf32, #tpu.memory_space<vmem>>, vector<16x32xf32>
    %c0_150 = arith.constant 0 : index
    %c0_151 = arith.constant 0 : index
    %260 = vector.load %arg8[%c0_150, %c0_151] : memref<31x32xf32, #tpu.memory_space<vmem>>, vector<1x32xf32>
    %261 = vector.broadcast %260 : vector<1x32xf32> to vector<16x32xf32>
    %262 = arith.mulf %259, %261 : vector<16x32xf32>
    %263 = arith.addf %258, %262 : vector<16x32xf32>
    %c1_152 = arith.constant 1 : index
    %c0_153 = arith.constant 0 : index
    %264 = vector.load %arg14[%c1_152, %c0_153] : memref<46x32xf32, #tpu.memory_space<vmem>>, vector<16x32xf32>
    %c1_154 = arith.constant 1 : index
    %c0_155 = arith.constant 0 : index
    %265 = vector.load %arg8[%c1_154, %c0_155] : memref<31x32xf32, #tpu.memory_space<vmem>>, vector<1x32xf32>
    %266 = vector.broadcast %265 : vector<1x32xf32> to vector<16x32xf32>
    %267 = arith.mulf %264, %266 : vector<16x32xf32>
    %268 = arith.addf %263, %267 : vector<16x32xf32>
    %c2_156 = arith.constant 2 : index
    %c0_157 = arith.constant 0 : index
    %269 = vector.load %arg14[%c2_156, %c0_157] : memref<46x32xf32, #tpu.memory_space<vmem>>, vector<16x32xf32>
    %c2_158 = arith.constant 2 : index
    %c0_159 = arith.constant 0 : index
    %270 = vector.load %arg8[%c2_158, %c0_159] : memref<31x32xf32, #tpu.memory_space<vmem>>, vector<1x32xf32>
    %271 = vector.broadcast %270 : vector<1x32xf32> to vector<16x32xf32>
    %272 = arith.mulf %269, %271 : vector<16x32xf32>
    %273 = arith.addf %268, %272 : vector<16x32xf32>
    %c3_160 = arith.constant 3 : index
    %c0_161 = arith.constant 0 : index
    %274 = vector.load %arg14[%c3_160, %c0_161] : memref<46x32xf32, #tpu.memory_space<vmem>>, vector<16x32xf32>
    %c3_162 = arith.constant 3 : index
    %c0_163 = arith.constant 0 : index
    %275 = vector.load %arg8[%c3_162, %c0_163] : memref<31x32xf32, #tpu.memory_space<vmem>>, vector<1x32xf32>
    %276 = vector.broadcast %275 : vector<1x32xf32> to vector<16x32xf32>
    %277 = arith.mulf %274, %276 : vector<16x32xf32>
    %278 = arith.addf %273, %277 : vector<16x32xf32>
    %c4_164 = arith.constant 4 : index
    %c0_165 = arith.constant 0 : index
    %279 = vector.load %arg14[%c4_164, %c0_165] : memref<46x32xf32, #tpu.memory_space<vmem>>, vector<16x32xf32>
    %c4_166 = arith.constant 4 : index
    %c0_167 = arith.constant 0 : index
    %280 = vector.load %arg8[%c4_166, %c0_167] : memref<31x32xf32, #tpu.memory_space<vmem>>, vector<1x32xf32>
    %281 = vector.broadcast %280 : vector<1x32xf32> to vector<16x32xf32>
    %282 = arith.mulf %279, %281 : vector<16x32xf32>
    %283 = arith.addf %278, %282 : vector<16x32xf32>
    %c5_168 = arith.constant 5 : index
    %c0_169 = arith.constant 0 : index
    %284 = vector.load %arg14[%c5_168, %c0_169] : memref<46x32xf32, #tpu.memory_space<vmem>>, vector<16x32xf32>
    %c5_170 = arith.constant 5 : index
    %c0_171 = arith.constant 0 : index
    %285 = vector.load %arg8[%c5_170, %c0_171] : memref<31x32xf32, #tpu.memory_space<vmem>>, vector<1x32xf32>
    %286 = vector.broadcast %285 : vector<1x32xf32> to vector<16x32xf32>
    %287 = arith.mulf %284, %286 : vector<16x32xf32>
    %288 = arith.addf %283, %287 : vector<16x32xf32>
    %c6_172 = arith.constant 6 : index
    %c0_173 = arith.constant 0 : index
    %289 = vector.load %arg14[%c6_172, %c0_173] : memref<46x32xf32, #tpu.memory_space<vmem>>, vector<16x32xf32>
    %c6_174 = arith.constant 6 : index
    %c0_175 = arith.constant 0 : index
    %290 = vector.load %arg8[%c6_174, %c0_175] : memref<31x32xf32, #tpu.memory_space<vmem>>, vector<1x32xf32>
    %291 = vector.broadcast %290 : vector<1x32xf32> to vector<16x32xf32>
    %292 = arith.mulf %289, %291 : vector<16x32xf32>
    %293 = arith.addf %288, %292 : vector<16x32xf32>
    %c7_176 = arith.constant 7 : index
    %c0_177 = arith.constant 0 : index
    %294 = vector.load %arg14[%c7_176, %c0_177] : memref<46x32xf32, #tpu.memory_space<vmem>>, vector<16x32xf32>
    %c7_178 = arith.constant 7 : index
    %c0_179 = arith.constant 0 : index
    %295 = vector.load %arg8[%c7_178, %c0_179] : memref<31x32xf32, #tpu.memory_space<vmem>>, vector<1x32xf32>
    %296 = vector.broadcast %295 : vector<1x32xf32> to vector<16x32xf32>
    %297 = arith.mulf %294, %296 : vector<16x32xf32>
    %298 = arith.addf %293, %297 : vector<16x32xf32>
    %c8_180 = arith.constant 8 : index
    %c0_181 = arith.constant 0 : index
    %299 = vector.load %arg14[%c8_180, %c0_181] : memref<46x32xf32, #tpu.memory_space<vmem>>, vector<16x32xf32>
    %c8_182 = arith.constant 8 : index
    %c0_183 = arith.constant 0 : index
    %300 = vector.load %arg8[%c8_182, %c0_183] : memref<31x32xf32, #tpu.memory_space<vmem>>, vector<1x32xf32>
    %301 = vector.broadcast %300 : vector<1x32xf32> to vector<16x32xf32>
    %302 = arith.mulf %299, %301 : vector<16x32xf32>
    %303 = arith.addf %298, %302 : vector<16x32xf32>
    %c9_184 = arith.constant 9 : index
    %c0_185 = arith.constant 0 : index
    %304 = vector.load %arg14[%c9_184, %c0_185] : memref<46x32xf32, #tpu.memory_space<vmem>>, vector<16x32xf32>
    %c9_186 = arith.constant 9 : index
    %c0_187 = arith.constant 0 : index
    %305 = vector.load %arg8[%c9_186, %c0_187] : memref<31x32xf32, #tpu.memory_space<vmem>>, vector<1x32xf32>
    %306 = vector.broadcast %305 : vector<1x32xf32> to vector<16x32xf32>
    %307 = arith.mulf %304, %306 : vector<16x32xf32>
    %308 = arith.addf %303, %307 : vector<16x32xf32>
    %c10_188 = arith.constant 10 : index
    %c0_189 = arith.constant 0 : index
    %309 = vector.load %arg14[%c10_188, %c0_189] : memref<46x32xf32, #tpu.memory_space<vmem>>, vector<16x32xf32>
    %c10_190 = arith.constant 10 : index
    %c0_191 = arith.constant 0 : index
    %310 = vector.load %arg8[%c10_190, %c0_191] : memref<31x32xf32, #tpu.memory_space<vmem>>, vector<1x32xf32>
    %311 = vector.broadcast %310 : vector<1x32xf32> to vector<16x32xf32>
    %312 = arith.mulf %309, %311 : vector<16x32xf32>
    %313 = arith.addf %308, %312 : vector<16x32xf32>
    %c11_192 = arith.constant 11 : index
    %c0_193 = arith.constant 0 : index
    %314 = vector.load %arg14[%c11_192, %c0_193] : memref<46x32xf32, #tpu.memory_space<vmem>>, vector<16x32xf32>
    %c11_194 = arith.constant 11 : index
    %c0_195 = arith.constant 0 : index
    %315 = vector.load %arg8[%c11_194, %c0_195] : memref<31x32xf32, #tpu.memory_space<vmem>>, vector<1x32xf32>
    %316 = vector.broadcast %315 : vector<1x32xf32> to vector<16x32xf32>
    %317 = arith.mulf %314, %316 : vector<16x32xf32>
    %318 = arith.addf %313, %317 : vector<16x32xf32>
    %c12_196 = arith.constant 12 : index
    %c0_197 = arith.constant 0 : index
    %319 = vector.load %arg14[%c12_196, %c0_197] : memref<46x32xf32, #tpu.memory_space<vmem>>, vector<16x32xf32>
    %c12_198 = arith.constant 12 : index
    %c0_199 = arith.constant 0 : index
    %320 = vector.load %arg8[%c12_198, %c0_199] : memref<31x32xf32, #tpu.memory_space<vmem>>, vector<1x32xf32>
    %321 = vector.broadcast %320 : vector<1x32xf32> to vector<16x32xf32>
    %322 = arith.mulf %319, %321 : vector<16x32xf32>
    %323 = arith.addf %318, %322 : vector<16x32xf32>
    %c13_200 = arith.constant 13 : index
    %c0_201 = arith.constant 0 : index
    %324 = vector.load %arg14[%c13_200, %c0_201] : memref<46x32xf32, #tpu.memory_space<vmem>>, vector<16x32xf32>
    %c13_202 = arith.constant 13 : index
    %c0_203 = arith.constant 0 : index
    %325 = vector.load %arg8[%c13_202, %c0_203] : memref<31x32xf32, #tpu.memory_space<vmem>>, vector<1x32xf32>
    %326 = vector.broadcast %325 : vector<1x32xf32> to vector<16x32xf32>
    %327 = arith.mulf %324, %326 : vector<16x32xf32>
    %328 = arith.addf %323, %327 : vector<16x32xf32>
    %c14_204 = arith.constant 14 : index
    %c0_205 = arith.constant 0 : index
    %329 = vector.load %arg14[%c14_204, %c0_205] : memref<46x32xf32, #tpu.memory_space<vmem>>, vector<16x32xf32>
    %c14_206 = arith.constant 14 : index
    %c0_207 = arith.constant 0 : index
    %330 = vector.load %arg8[%c14_206, %c0_207] : memref<31x32xf32, #tpu.memory_space<vmem>>, vector<1x32xf32>
    %331 = vector.broadcast %330 : vector<1x32xf32> to vector<16x32xf32>
    %332 = arith.mulf %329, %331 : vector<16x32xf32>
    %333 = arith.addf %328, %332 : vector<16x32xf32>
    %c15_208 = arith.constant 15 : index
    %c0_209 = arith.constant 0 : index
    %334 = vector.load %arg14[%c15_208, %c0_209] : memref<46x32xf32, #tpu.memory_space<vmem>>, vector<16x32xf32>
    %c15_210 = arith.constant 15 : index
    %c0_211 = arith.constant 0 : index
    %335 = vector.load %arg8[%c15_210, %c0_211] : memref<31x32xf32, #tpu.memory_space<vmem>>, vector<1x32xf32>
    %336 = vector.broadcast %335 : vector<1x32xf32> to vector<16x32xf32>
    %337 = arith.mulf %334, %336 : vector<16x32xf32>
    %338 = arith.addf %333, %337 : vector<16x32xf32>
    %c16_212 = arith.constant 16 : index
    %c0_213 = arith.constant 0 : index
    %339 = vector.load %arg14[%c16_212, %c0_213] : memref<46x32xf32, #tpu.memory_space<vmem>>, vector<16x32xf32>
    %c16_214 = arith.constant 16 : index
    %c0_215 = arith.constant 0 : index
    %340 = vector.load %arg8[%c16_214, %c0_215] : memref<31x32xf32, #tpu.memory_space<vmem>>, vector<1x32xf32>
    %341 = vector.broadcast %340 : vector<1x32xf32> to vector<16x32xf32>
    %342 = arith.mulf %339, %341 : vector<16x32xf32>
    %343 = arith.addf %338, %342 : vector<16x32xf32>
    %c17_216 = arith.constant 17 : index
    %c0_217 = arith.constant 0 : index
    %344 = vector.load %arg14[%c17_216, %c0_217] : memref<46x32xf32, #tpu.memory_space<vmem>>, vector<16x32xf32>
    %c17_218 = arith.constant 17 : index
    %c0_219 = arith.constant 0 : index
    %345 = vector.load %arg8[%c17_218, %c0_219] : memref<31x32xf32, #tpu.memory_space<vmem>>, vector<1x32xf32>
    %346 = vector.broadcast %345 : vector<1x32xf32> to vector<16x32xf32>
    %347 = arith.mulf %344, %346 : vector<16x32xf32>
    %348 = arith.addf %343, %347 : vector<16x32xf32>
    %c18_220 = arith.constant 18 : index
    %c0_221 = arith.constant 0 : index
    %349 = vector.load %arg14[%c18_220, %c0_221] : memref<46x32xf32, #tpu.memory_space<vmem>>, vector<16x32xf32>
    %c18_222 = arith.constant 18 : index
    %c0_223 = arith.constant 0 : index
    %350 = vector.load %arg8[%c18_222, %c0_223] : memref<31x32xf32, #tpu.memory_space<vmem>>, vector<1x32xf32>
    %351 = vector.broadcast %350 : vector<1x32xf32> to vector<16x32xf32>
    %352 = arith.mulf %349, %351 : vector<16x32xf32>
    %353 = arith.addf %348, %352 : vector<16x32xf32>
    %c19_224 = arith.constant 19 : index
    %c0_225 = arith.constant 0 : index
    %354 = vector.load %arg14[%c19_224, %c0_225] : memref<46x32xf32, #tpu.memory_space<vmem>>, vector<16x32xf32>
    %c19_226 = arith.constant 19 : index
    %c0_227 = arith.constant 0 : index
    %355 = vector.load %arg8[%c19_226, %c0_227] : memref<31x32xf32, #tpu.memory_space<vmem>>, vector<1x32xf32>
    %356 = vector.broadcast %355 : vector<1x32xf32> to vector<16x32xf32>
    %357 = arith.mulf %354, %356 : vector<16x32xf32>
    %358 = arith.addf %353, %357 : vector<16x32xf32>
    %c20_228 = arith.constant 20 : index
    %c0_229 = arith.constant 0 : index
    %359 = vector.load %arg14[%c20_228, %c0_229] : memref<46x32xf32, #tpu.memory_space<vmem>>, vector<16x32xf32>
    %c20_230 = arith.constant 20 : index
    %c0_231 = arith.constant 0 : index
    %360 = vector.load %arg8[%c20_230, %c0_231] : memref<31x32xf32, #tpu.memory_space<vmem>>, vector<1x32xf32>
    %361 = vector.broadcast %360 : vector<1x32xf32> to vector<16x32xf32>
    %362 = arith.mulf %359, %361 : vector<16x32xf32>
    %363 = arith.addf %358, %362 : vector<16x32xf32>
    %c21_232 = arith.constant 21 : index
    %c0_233 = arith.constant 0 : index
    %364 = vector.load %arg14[%c21_232, %c0_233] : memref<46x32xf32, #tpu.memory_space<vmem>>, vector<16x32xf32>
    %c21_234 = arith.constant 21 : index
    %c0_235 = arith.constant 0 : index
    %365 = vector.load %arg8[%c21_234, %c0_235] : memref<31x32xf32, #tpu.memory_space<vmem>>, vector<1x32xf32>
    %366 = vector.broadcast %365 : vector<1x32xf32> to vector<16x32xf32>
    %367 = arith.mulf %364, %366 : vector<16x32xf32>
    %368 = arith.addf %363, %367 : vector<16x32xf32>
    %c22_236 = arith.constant 22 : index
    %c0_237 = arith.constant 0 : index
    %369 = vector.load %arg14[%c22_236, %c0_237] : memref<46x32xf32, #tpu.memory_space<vmem>>, vector<16x32xf32>
    %c22_238 = arith.constant 22 : index
    %c0_239 = arith.constant 0 : index
    %370 = vector.load %arg8[%c22_238, %c0_239] : memref<31x32xf32, #tpu.memory_space<vmem>>, vector<1x32xf32>
    %371 = vector.broadcast %370 : vector<1x32xf32> to vector<16x32xf32>
    %372 = arith.mulf %369, %371 : vector<16x32xf32>
    %373 = arith.addf %368, %372 : vector<16x32xf32>
    %c23_240 = arith.constant 23 : index
    %c0_241 = arith.constant 0 : index
    %374 = vector.load %arg14[%c23_240, %c0_241] : memref<46x32xf32, #tpu.memory_space<vmem>>, vector<16x32xf32>
    %c23_242 = arith.constant 23 : index
    %c0_243 = arith.constant 0 : index
    %375 = vector.load %arg8[%c23_242, %c0_243] : memref<31x32xf32, #tpu.memory_space<vmem>>, vector<1x32xf32>
    %376 = vector.broadcast %375 : vector<1x32xf32> to vector<16x32xf32>
    %377 = arith.mulf %374, %376 : vector<16x32xf32>
    %378 = arith.addf %373, %377 : vector<16x32xf32>
    %c24_244 = arith.constant 24 : index
    %c0_245 = arith.constant 0 : index
    %379 = vector.load %arg14[%c24_244, %c0_245] : memref<46x32xf32, #tpu.memory_space<vmem>>, vector<16x32xf32>
    %c24_246 = arith.constant 24 : index
    %c0_247 = arith.constant 0 : index
    %380 = vector.load %arg8[%c24_246, %c0_247] : memref<31x32xf32, #tpu.memory_space<vmem>>, vector<1x32xf32>
    %381 = vector.broadcast %380 : vector<1x32xf32> to vector<16x32xf32>
    %382 = arith.mulf %379, %381 : vector<16x32xf32>
    %383 = arith.addf %378, %382 : vector<16x32xf32>
    %c25_248 = arith.constant 25 : index
    %c0_249 = arith.constant 0 : index
    %384 = vector.load %arg14[%c25_248, %c0_249] : memref<46x32xf32, #tpu.memory_space<vmem>>, vector<16x32xf32>
    %c25_250 = arith.constant 25 : index
    %c0_251 = arith.constant 0 : index
    %385 = vector.load %arg8[%c25_250, %c0_251] : memref<31x32xf32, #tpu.memory_space<vmem>>, vector<1x32xf32>
    %386 = vector.broadcast %385 : vector<1x32xf32> to vector<16x32xf32>
    %387 = arith.mulf %384, %386 : vector<16x32xf32>
    %388 = arith.addf %383, %387 : vector<16x32xf32>
    %c26_252 = arith.constant 26 : index
    %c0_253 = arith.constant 0 : index
    %389 = vector.load %arg14[%c26_252, %c0_253] : memref<46x32xf32, #tpu.memory_space<vmem>>, vector<16x32xf32>
    %c26_254 = arith.constant 26 : index
    %c0_255 = arith.constant 0 : index
    %390 = vector.load %arg8[%c26_254, %c0_255] : memref<31x32xf32, #tpu.memory_space<vmem>>, vector<1x32xf32>
    %391 = vector.broadcast %390 : vector<1x32xf32> to vector<16x32xf32>
    %392 = arith.mulf %389, %391 : vector<16x32xf32>
    %393 = arith.addf %388, %392 : vector<16x32xf32>
    %c27_256 = arith.constant 27 : index
    %c0_257 = arith.constant 0 : index
    %394 = vector.load %arg14[%c27_256, %c0_257] : memref<46x32xf32, #tpu.memory_space<vmem>>, vector<16x32xf32>
    %c27_258 = arith.constant 27 : index
    %c0_259 = arith.constant 0 : index
    %395 = vector.load %arg8[%c27_258, %c0_259] : memref<31x32xf32, #tpu.memory_space<vmem>>, vector<1x32xf32>
    %396 = vector.broadcast %395 : vector<1x32xf32> to vector<16x32xf32>
    %397 = arith.mulf %394, %396 : vector<16x32xf32>
    %398 = arith.addf %393, %397 : vector<16x32xf32>
    %c28_260 = arith.constant 28 : index
    %c0_261 = arith.constant 0 : index
    %399 = vector.load %arg14[%c28_260, %c0_261] : memref<46x32xf32, #tpu.memory_space<vmem>>, vector<16x32xf32>
    %c28_262 = arith.constant 28 : index
    %c0_263 = arith.constant 0 : index
    %400 = vector.load %arg8[%c28_262, %c0_263] : memref<31x32xf32, #tpu.memory_space<vmem>>, vector<1x32xf32>
    %401 = vector.broadcast %400 : vector<1x32xf32> to vector<16x32xf32>
    %402 = arith.mulf %399, %401 : vector<16x32xf32>
    %403 = arith.addf %398, %402 : vector<16x32xf32>
    %c29_264 = arith.constant 29 : index
    %c0_265 = arith.constant 0 : index
    %404 = vector.load %arg14[%c29_264, %c0_265] : memref<46x32xf32, #tpu.memory_space<vmem>>, vector<16x32xf32>
    %c29_266 = arith.constant 29 : index
    %c0_267 = arith.constant 0 : index
    %405 = vector.load %arg8[%c29_266, %c0_267] : memref<31x32xf32, #tpu.memory_space<vmem>>, vector<1x32xf32>
    %406 = vector.broadcast %405 : vector<1x32xf32> to vector<16x32xf32>
    %407 = arith.mulf %404, %406 : vector<16x32xf32>
    %408 = arith.addf %403, %407 : vector<16x32xf32>
    %c30_268 = arith.constant 30 : index
    %c0_269 = arith.constant 0 : index
    %409 = vector.load %arg14[%c30_268, %c0_269] : memref<46x32xf32, #tpu.memory_space<vmem>>, vector<16x32xf32>
    %c30_270 = arith.constant 30 : index
    %c0_271 = arith.constant 0 : index
    %410 = vector.load %arg8[%c30_270, %c0_271] : memref<31x32xf32, #tpu.memory_space<vmem>>, vector<1x32xf32>
    %411 = vector.broadcast %410 : vector<1x32xf32> to vector<16x32xf32>
    %412 = arith.mulf %409, %411 : vector<16x32xf32>
    %413 = arith.addf %408, %412 : vector<16x32xf32>
    %414 = vector.broadcast %6 : vector<1x32xf32> to vector<16x32xf32>
    %415 = arith.mulf %413, %414 : vector<16x32xf32>
    %416 = vector.broadcast %7 : vector<1x32xf32> to vector<16x32xf32>
    %417 = arith.addf %415, %416 : vector<16x32xf32>
    %418 = arith.negf %417 : vector<16x32xf32>
    %419 = math.exp %418 : vector<16x32xf32>
    %cst_272 = arith.constant 1.000000e+00 : f32
    %420 = vector.broadcast %cst_272 : f32 to vector<16x32xf32>
    %421 = arith.addf %420, %419 : vector<16x32xf32>
    %422 = arith.divf %420, %421 : vector<16x32xf32>
    %423 = arith.mulf %417, %422 : vector<16x32xf32>
    %cst_273 = arith.constant dense<0.000000e+00> : vector<16x32xf32>
    %424 = tpu.matmul %423, %8, %cst_273 {dimension_numbers = #tpu.dot_dimension_numbers<[1], [0], [0], [1], [0, 0, 1, 1], [], []>} : vector<16x32xf32>, vector<32x32xf32>, vector<16x32xf32> -> vector<16x32xf32>
    %425 = vector.broadcast %9 : vector<1x32xf32> to vector<16x32xf32>
    %426 = arith.addf %424, %425 : vector<16x32xf32>
    %c1_274 = arith.constant 1 : index
    %c0_275 = arith.constant 0 : index
    %c0_276 = arith.constant 0 : index
    %427 = vector.load %arg13[%c1_274, %c0_275, %c0_276] : memref<2x16x32xf32, #tpu.memory_space<vmem>>, vector<1x16x32xf32>
    %428 = vector.shape_cast %427 : vector<1x16x32xf32> to vector<16x32xf32>
    %429 = vector.shape_cast %426 : vector<16x32xf32> to vector<1x16x32xf32>
    tpu.vector_store %arg13[%c1_274, %c0_275, %c0_276], %429 {strides = array<i32>} : memref<2x16x32xf32, #tpu.memory_space<vmem>>, vector<1x16x32xf32>,
    return
  }
  func.func @transform_0(%arg0: i32) -> (i32, i32, i32) {
    %c0_i32 = arith.constant 0 : i32
    %c0_i32_0 = arith.constant 0 : i32
    %c0_i32_1 = arith.constant 0 : i32
    return %arg0, %c0_i32, %c0_i32_0 : i32, i32, i32
  }
  func.func @transform_1(%arg0: i32) -> (i32, i32) {
    %c0_i32 = arith.constant 0 : i32
    %c0_i32_0 = arith.constant 0 : i32
    %c0_i32_1 = arith.constant 0 : i32
    return %c0_i32, %c0_i32_0 : i32, i32
  }
  func.func @transform_2(%arg0: i32) -> (i32, i32) {
    %c0_i32 = arith.constant 0 : i32
    %c0_i32_0 = arith.constant 0 : i32
    %c0_i32_1 = arith.constant 0 : i32
    return %c0_i32, %c0_i32_0 : i32, i32
  }
  func.func @transform_3(%arg0: i32) -> (i32, i32) {
    %c0_i32 = arith.constant 0 : i32
    %c0_i32_0 = arith.constant 0 : i32
    %c0_i32_1 = arith.constant 0 : i32
    return %c0_i32, %c0_i32_0 : i32, i32
  }
  func.func @transform_4(%arg0: i32) -> (i32, i32) {
    %c0_i32 = arith.constant 0 : i32
    %c0_i32_0 = arith.constant 0 : i32
    %c0_i32_1 = arith.constant 0 : i32
    return %c0_i32, %c0_i32_0 : i32, i32
  }
  func.func @transform_5(%arg0: i32) -> (i32, i32) {
    %c0_i32 = arith.constant 0 : i32
    %c0_i32_0 = arith.constant 0 : i32
    %c0_i32_1 = arith.constant 0 : i32
    return %c0_i32, %c0_i32_0 : i32, i32
  }
  func.func @transform_6(%arg0: i32) -> (i32, i32) {
    %c0_i32 = arith.constant 0 : i32
    %c0_i32_0 = arith.constant 0 : i32
    %c0_i32_1 = arith.constant 0 : i32
    return %c0_i32, %c0_i32_0 : i32, i32
  }
  func.func @transform_7(%arg0: i32) -> (i32, i32) {
    %c0_i32 = arith.constant 0 : i32
    %c0_i32_0 = arith.constant 0 : i32
    %c0_i32_1 = arith.constant 0 : i32
    return %c0_i32, %c0_i32_0 : i32, i32
  }
  func.func @transform_8(%arg0: i32) -> (i32, i32) {
    %c0_i32 = arith.constant 0 : i32
    %c0_i32_0 = arith.constant 0 : i32
    %c0_i32_1 = arith.constant 0 : i32
    return %c0_i32, %c0_i32_0 : i32, i32
  }
  func.func @transform_9(%arg0: i32) -> (i32, i32) {
    %c0_i32 = arith.constant 0 : i32
    %c0_i32_0 = arith.constant 0 : i32
    %c0_i32_1 = arith.constant 0 : i32
    return %c0_i32, %c0_i32_0 : i32, i32
  }
  func.func @transform_10(%arg0: i32) -> (i32, i32) {
    %c0_i32 = arith.constant 0 : i32
    %c0_i32_0 = arith.constant 0 : i32
    %c0_i32_1 = arith.constant 0 : i32
    return %c0_i32, %c0_i32_0 : i32, i32
  }
  func.func @transform_11(%arg0: i32) -> (i32, i32) {
    %c0_i32 = arith.constant 0 : i32
    %c0_i32_0 = arith.constant 0 : i32
    %c0_i32_1 = arith.constant 0 : i32
    return %c0_i32, %c0_i32_0 : i32, i32
  }
  func.func @transform_12(%arg0: i32) -> (i32, i32, i32) {
    %c0_i32 = arith.constant 0 : i32
    %c0_i32_0 = arith.constant 0 : i32
    %c0_i32_1 = arith.constant 0 : i32
    return %arg0, %c0_i32, %c0_i32_0 : i32, i32, i32
  }
}

</mosaic_0001>

<bundles_post_ra>
// kernel: tpu_custom_call.1
= control target key start
LH: loop header
LB: loop body
LE: loop exit
PB: predicated region body
PF: predicated region fallthrough
CT: control target
= control target key end

     0   :  { %17 = vsyncpa [#allocation4], 0  ;;  %s2367_s0 = inlined_call_operand.hbm [shape: f32[2,16,32], index: 0, kind: input, shape index: {}]   ;;  %s2368_s1 = inlined_call_operand.vmem [shape: f32[1,32], index: 1, kind: input, shape index: {}]   ;;  %s2369_s2 = inlined_call_operand.vmem [shape: f32[1,32], index: 2, kind: input, shape index: {}]   ;;  %s2370_s3 = inlined_call_operand.hbm [shape: f32[32,32], index: 3, kind: input, shape index: {}]   ;;  %s2371_s4 = inlined_call_operand.vmem [shape: f32[1,32], index: 4, kind: input, shape index: {}]   ;;  %s2372_s5 = inlined_call_operand.hbm [shape: f32[32,32], index: 5, kind: input, shape index: {}]   ;;  %s2373_s6 = inlined_call_operand.vmem [shape: f32[1,32], index: 6, kind: input, shape index: {}]   ;;  %s2374_s7 = inlined_call_operand.hbm [shape: f32[31,32], index: 7, kind: input, shape index: {}]   ;;  %s2375_s8 = inlined_call_operand.vmem [shape: f32[1,32], index: 8, kind: input, shape index: {}]   ;;  %s2376_s9 = inlined_call_operand.hbm [shape: f32[1,32], index: 9, kind: input, shape index: {}]   ;;  %s2377_s10 = inlined_call_operand.vmem [shape: f32[32,32], index: 10, kind: input, shape index: {}]   ;;  %s2378_s11 = inlined_call_operand.vmem [shape: f32[1,32], index: 11, kind: input, shape index: {}]   ;;  %s2379_s12 = inlined_call_operand.hbm [shape: f32[2,16,32], index: 12, kind: output, shape index: {}]  }
   0x1   :  { %18 = vsyncpa [#allocation7], 0 }
   0x2   :  { %19 = vsyncpa [#allocation10], 0 }
   0x3   :  { %20 = vsyncpa [#allocation5], 0  ;;  %s1873_s21 = smov [#allocation6]   ;;  %s1874_s23 = smov [#allocation9]  }
   0x4   :  { %s42_s22 = sshll.u32 %s1873_s21, 4  ;;  %s70_s24 = sshll.u32 %s1874_s23, 4  ;;  %s43_s22 = int_to_ptr.vmem [resolvable:$true] %s42_s22  ;;  %s1947_s24 = int_to_ptr.vmem [resolvable:$true] %s70_s24 }
   0x5   :  { %s1733_s27 = scalar_lea.hbm %s2370_s3, 512 }
   0x6   :  { %p1734_p0 = scmp.ne.s32.totalorder %s2370_s3, %s1733_s27  ;;  %p1737_p1 = scmp.lt.u32.totalorder %s1733_s27, %s2370_s3 }
   0x8   :  { %p1739_p2 = pnand %p1737_p1, %p1734_p0 }
   0xa   :  { %1742 = shalt.err (!%p1739_p2)
}
   0xb   :  { %s1743_s14 = scalar_lea.vmem %s43_s22, 512  ;;  %p1748_p4 = scmp.lt.s32.totalorder %s43_s22, %s43_s22 }
   0xc   :  { %p1744_p3 = scmp.ne.s32.totalorder %s43_s22, %s1743_s14  ;;  %p1749_p5 = scmp.lt.s32.totalorder %s1743_s14, %s1743_s14 }
   0xe   :  { %p1750_p6 = por %p1749_p5, %p1748_p4 }
  0x10   :  { %p1751_p7 = pnand %p1750_p6, %p1744_p3 }
  0x12   :  { %1754 = shalt.err (!%p1751_p7)
}
  0x13   :  { %s1875_s15 = smov 128   ;;  %s1876_s16 = smov 8  }
  0x14   :  { %48 = dma.hbm_to_vmem [thread:$0]  %s2370_s3, 512, %s43_s22, [#allocation7], %s1875_s15, %s1875_s15, %s1876_s16  }
  0x15   :  { %s1755_s21 = scalar_lea.hbm %s2374_s7, 512 }
  0x16   :  { %p1756_p8 = scmp.ne.s32.totalorder %s2374_s7, %s1755_s21  ;;  %p1759_p9 = scmp.lt.u32.totalorder %s1755_s21, %s2374_s7 }
  0x18   :  { %p1761_p10 = pnand %p1759_p9, %p1756_p8 }
  0x1a   :  { %1764 = shalt.err (!%p1761_p10)
}
  0x1b   :  { %s1765_s28 = scalar_lea.vmem %s1947_s24, 512  ;;  %p1770_p12 = scmp.lt.s32.totalorder %s1947_s24, %s1947_s24 }
  0x1c   :  { %p1766_p11 = scmp.ne.s32.totalorder %s1947_s24, %s1765_s28  ;;  %p1771_p13 = scmp.lt.s32.totalorder %s1765_s28, %s1765_s28 }
  0x1e   :  { %p1772_p0 = por %p1771_p13, %p1770_p12 }
  0x20   :  { %p1773_p1 = pnand %p1772_p0, %p1766_p11 }
  0x22   :  { %1776 = shalt.err (!%p1773_p1)
}
  0x23   :  { %76 = dma.hbm_to_vmem [thread:$0]  %s2374_s7, 512, %s1947_s24, [#allocation10], %s1875_s15, %s1875_s15, %s1876_s16  }
  0x24   :  { %s1877_s29 = smov [#allocation3]   ;;  %s1878_s13 = smov [#allocation8]  }
  0x25   :  { %s26_s30 = sshll.u32 %s1877_s29, 4  ;;  %s56_s14 = sshll.u32 %s1878_s13, 4  ;;  %s27_s30 = int_to_ptr.vmem [resolvable:$true] %s26_s30  ;;  %s1984_s14 = int_to_ptr.vmem [resolvable:$true] %s56_s14 }
  0x26   :  { %s1777_s19 = scalar_lea.hbm %s2367_s0, 512 }
  0x27   :  { %p1778_p2 = scmp.ne.s32.totalorder %s2367_s0, %s1777_s19  ;;  %p1781_p3 = scmp.lt.u32.totalorder %s1777_s19, %s2367_s0 }
  0x29   :  { %p1783_p4 = pnand %p1781_p3, %p1778_p2 }
  0x2b   :  { %1786 = shalt.err (!%p1783_p4)
}
  0x2c   :  { %s1787_s7 = scalar_lea.vmem %s27_s30, 512  ;;  %p1792_p6 = scmp.lt.s32.totalorder %s27_s30, %s27_s30 }
  0x2d   :  { %p1788_p5 = scmp.ne.s32.totalorder %s27_s30, %s1787_s7  ;;  %p1793_p7 = scmp.lt.s32.totalorder %s1787_s7, %s1787_s7 }
  0x2f   :  { %p1794_p8 = por %p1793_p7, %p1792_p6 }
  0x31   :  { %p1795_p9 = pnand %p1794_p8, %p1788_p5 }
  0x33   :  { %1798 = shalt.err (!%p1795_p9)
}
  0x34   :  { %32 = dma.hbm_to_vmem [thread:$0]  %s2367_s0, 512, %s27_s30, [#allocation4], %s1875_s15, %s1875_s15, %s1876_s16  }
  0x35   :  { %s1799_s3 = scalar_lea.hbm %s2372_s5, 512 }
  0x36   :  { %p1800_p10 = scmp.ne.s32.totalorder %s2372_s5, %s1799_s3  ;;  %p1803_p11 = scmp.lt.u32.totalorder %s1799_s3, %s2372_s5 }
  0x38   :  { %p1805_p12 = pnand %p1803_p11, %p1800_p10 }
  0x3a   :  { %1808 = shalt.err (!%p1805_p12)
}
  0x3b   :  { %s1809_s18 = scalar_lea.vmem %s1984_s14, 512  ;;  %p1814_p0 = scmp.lt.s32.totalorder %s1984_s14, %s1984_s14 }
  0x3c   :  { %p1810_p13 = scmp.ne.s32.totalorder %s1984_s14, %s1809_s18  ;;  %p1815_p1 = scmp.lt.s32.totalorder %s1809_s18, %s1809_s18 }
  0x3e   :  { %p1816_p2 = por %p1815_p1, %p1814_p0 }
  0x40   :  { %p1817_p3 = pnand %p1816_p2, %p1810_p13 }
  0x42   :  { %1820 = shalt.err (!%p1817_p3)
}
  0x43   :  { %62 = dma.hbm_to_vmem [thread:$0]  %s2372_s5, 512, %s1984_s14, [#allocation7], %s1875_s15, %s1875_s15, %s1876_s16  }
  0x44   :  { %s1879_s19 = smov [#allocation11]   ;;  %s1821_s25 = scalar_lea.hbm %s2376_s9, 16 }
  0x45   :  { %s85_s20 = sshll.u32 %s1879_s19, 4  ;;  %p1822_p4 = scmp.ne.s32.totalorder %s2376_s9, %s1821_s25  ;;  %s86_s20 = int_to_ptr.vmem [resolvable:$true] %s85_s20 }
  0x46   :  { %p1825_p5 = scmp.lt.u32.totalorder %s1821_s25, %s2376_s9 }
  0x48   :  { %p1827_p6 = pnand %p1825_p5, %p1822_p4 }
  0x4a   :  { %1830 = shalt.err (!%p1827_p6)
}
  0x4b   :  { %s1831_s28 = scalar_lea.vmem %s86_s20, 16  ;;  %s1835_s5 = scalar_lea.vmem %s86_s20, 32 }
  0x4c   :  { %p1832_p7 = scmp.ne.s32.totalorder %s86_s20, %s1831_s28  ;;  %p1836_p8 = scmp.lt.s32.totalorder %s86_s20, %s86_s20 }
  0x4d   :  { %p1837_p9 = scmp.lt.s32.totalorder %s1835_s5, %s1831_s28 }
  0x4f   :  { %p1838_p10 = por %p1837_p9, %p1836_p8 }
  0x51   :  { %p1839_p11 = pnand %p1838_p10, %p1832_p7 }
  0x53   :  { %1842 = shalt.err (!%p1839_p11)
}
  0x54   :  { %88 = dma.hbm_to_vmem [thread:$0]  %s2376_s9, 16, %s86_s20, [#allocation10]  }
  0x55   :  { %1865 = dma.done.wait [#allocation4], 512  }
  0x56   :  { %1866 = vsyncadd [#allocation4], 4294966784 }
  0x57   :  { %1867 = dma.done.wait [#allocation7], 1024  }
  0x58   :  { %1868 = vsyncadd [#allocation7], 4294966272 }
  0x59   :  { %1869 = dma.done.wait [#allocation10], 528  }
  0x5a   :  { %1870 = vsyncadd [#allocation10], 4294966768  ;;  %vm127_vm0 = vcmask 261120   ;;  %v135_v0 = vld [vmem:[#allocation3] sm:$0xff]  ;;  %v136_v1 = vld [vmem:[#allocation3 + $0x8] sm:$0xff]  ;;  %v1880_v63 = vmov 0.0  }
  0x5b   :  { %v137_v2 = vsel %vm127_vm0, %v135_v0, 0.0  ;;  %v140_v3 = vsel %vm127_vm0, %v136_v1, 0.0  ;;  %v802_v4 = vld [vmem:[#allocation3 + $0x10] sm:$0xff]  ;;  %v803_v15 = vld [vmem:[#allocation3 + $0x18] sm:$0xff]  ;;  %v110_v18 = vld [vmem:[#allocation6] sm:$0xff]  ;;  %128 = vst.msk [vmem:[#allocation2] sm:$0xff] %vm127_vm0, %v1880_v63 }
  0x5c   :  { %138 = vadd.xlane.f32.xlu0 %v137_v2  ;;  %v804_v5 = vsel %vm127_vm0, %v802_v4, 0.0  ;;  %v807_v17 = vsel %vm127_vm0, %v803_v15, 0.0  ;;  %v111_v19 = vld [vmem:[#allocation6 + $0x8] sm:$0xff]  ;;  %v115_v20 = vld [vmem:[#allocation8] sm:$0xff]  ;;  %v112_v23 = vld [vmem:[#allocation6 + $0x10] sm:$0xff]  ;;  %129 = vst.msk [vmem:[#allocation2 + $0x8] sm:$0xff] %vm127_vm0, %v1880_v63 }
  0x5d   :  { %v1636_v21 = vpack.c.bf16 %v111_v19, %v110_v18  ;;  %v116_v22 = vld [vmem:[#allocation8 + $0x8] sm:$0xff]  ;;  %v113_v24 = vld [vmem:[#allocation6 + $0x18] sm:$0xff]  ;;  %v117_v27 = vld [vmem:[#allocation8 + $0x10] sm:$0xff]  ;;  %130 = vst.msk [vmem:[#allocation2 + $0x10] sm:$0xff] %vm127_vm0, %v1880_v63  ;;  %vm133_vm1 = vcmask 259072  }
  0x5e   :  { %v2039_v25 = vpack.c.bf16 %v116_v22, %v115_v20  ;;  %v1640_v26 = vpack.c.bf16 %v113_v24, %v112_v23  ;;  %v118_v28 = vld [vmem:[#allocation8 + $0x18] sm:$0xff]  ;;  %v1445_v46 = vld [vmem:[%s2368_s1] ss:$0 sm:$0xff]  ;;  %131 = vst.msk [vmem:[#allocation2 + $0x18] sm:$0xff] %vm127_vm0, %v1880_v63  ;;  %132 = vst.msk [vmem:[#allocation2 + $0x20] sm:$0xff] %vm127_vm0, %v1880_v63 }
  0x5f   :  { %1637 = vmatprep.subr.bf16.mxu0 %v1636_v21  ;;  %v2043_v29 = vpack.c.bf16 %v118_v28, %v117_v27  ;;  %v1446_v49 = vld [vmem:[%s2369_s2] ss:$0 sm:$0xff]  ;;  %134 = vst.msk [vmem:[#allocation2 + $0x28] sm:$0x3f] %vm133_vm1, %v1880_v63  ;;  %v2092_v23 = vld [vmem:[#allocation9] ss:$0 sm:$0xff] }
  0x60   :  { %141 = vadd.xlane.f32.xlu0 %v140_v3  ;;  %1645 = vmatprep.subr.bf16.mxu1 %v2039_v25  ;;  %v2122_v63 = vld [vmem:[#allocation9 + $0x7] ss:$0 sm:$0xff] }
  0x61   :  { %1639 = vmatpush3.bf16.msra.mxu0 %v1636_v21  ;;  %1647 = vmatpush3.bf16.msra.mxu1 %v2039_v25 }
  0x62   :  { %1641 = vmatprep.subr.bf16.mxu0 %v1640_v26  ;;  %1649 = vmatprep.subr.bf16.mxu1 %v2043_v29  ;;  %v364_v22 = vld [vmem:[#allocation2] sm:$0xff] }
  0x63   :  { %v375_v24 = vld [vmem:[#allocation2 + $0x1] sm:$0xff]  ;;  %v371_v27 = vmul.f32 %v2092_v23, %v364_v22  ;;  %v2140_v22 = vld [vmem:[#allocation9 + $0xb] ss:$0 sm:$0xff] }
  0x64   :  { %805 = vadd.xlane.f32.xlu0 %v804_v5 }
  0x65   :  { %1643 = vmatpush3.bf16.msra.mxu0 %v1640_v26  ;;  %1651 = vmatpush3.bf16.msra.mxu1 %v2043_v29 }
  0x66   :  { %1661 = vmatprep.subr.bf16.mxu1 %v1636_v21 }
  0xe9   :  { %v139_v6 = vpop.xlane.xlu0 %138 }
  0xea   :  { %v144_v7 = vmul.f32 0.03125, %v139_v6 }
  0xec   :  { %v146_v8 = vsub.f32 %v135_v0, %v144_v7  ;;  %v122_v7 = vld [vmem:[%s2377_s10] sm:$0xff] }
  0xed   :  { %v142_v9 = vpop.xlane.xlu0 %141 }
  0xee   :  { %v145_v10 = vmul.f32 0.03125, %v142_v9  ;;  %v148_v11 = vmul.f32 %v146_v8, %v146_v8  ;;  %v124_v9 = vld [vmem:[%s2377_s10 + $0x10] sm:$0xff] }
  0xf0   :  { %v147_v12 = vsub.f32 %v136_v1, %v145_v10  ;;  %v150_v13 = vsel %vm127_vm0, %v148_v11, 0.0  ;;  %v125_v11 = vld [vmem:[%s2377_s10 + $0x18] sm:$0xff] }
  0xf1   :  { %151 = vadd.xlane.f32.xlu1 %v150_v13  ;;  %v806_v30 = vpop.xlane.xlu0 %805  ;;  %v2087_v13 = vld [vmem:[%s2373_s6] ss:$0 sm:$0xff] }
  0xf2   :  { %v149_v14 = vmul.f32 %v147_v12, %v147_v12  ;;  %v810_v31 = vmul.f32 0.03125, %v806_v30  ;;  %v386_v30 = vld [vmem:[#allocation2 + $0x2] sm:$0xff] }
  0xf4   :  { %v153_v16 = vsel %vm127_vm0, %v149_v14, 0.0  ;;  %v812_v32 = vsub.f32 %v802_v4, %v810_v31  ;;  %v2098_v31 = vld [vmem:[#allocation9 + $0x2] ss:$0 sm:$0xff] }
  0xf5   :  { %154 = vadd.xlane.f32.xlu1 %v153_v16 }
  0xf6   :  { %v814_v33 = vmul.f32 %v812_v32, %v812_v32 }
  0xf8   :  { %v816_v34 = vsel %vm127_vm0, %v814_v33, 0.0 }
  0xf9   :  { %808 = vadd.xlane.f32.xlu1 %v807_v17  ;;  %817 = vadd.xlane.f32.xlu0 %v816_v34  ;;  %v393_v34 = vmul.f32 %v2098_v31, %v386_v30 }
 0x17e   :  { %v152_v35 = vpop.xlane.xlu1 %151 }
 0x17f   :  { %v156_v36 = vmul.f32 0.03125, %v152_v35 }
 0x181   :  { %v158_v37 = vadd.f32 1e-05, %v156_v36 }
 0x182   :  { %v155_v38 = vpop.xlane.xlu1 %154 }
 0x183   :  { %1693 = vrsqrt.f32 %v158_v37  ;;  %v157_v39 = vmul.f32 0.03125, %v155_v38  ;;  %v397_v37 = vld [vmem:[#allocation2 + $0x3] sm:$0xff]  ;;  %v2101_v38 = vld [vmem:[#allocation9 + $0x3] ss:$0 sm:$0xff] }
 0x185   :  { %v159_v40 = vadd.f32 1e-05, %v157_v39 }
 0x186   :  { %v809_v41 = vpop.xlane.xlu1 %808  ;;  %v818_v56 = vpop.xlane.xlu0 %817 }
 0x187   :  { %1695 = vrsqrt.f32 %v159_v40  ;;  %v811_v42 = vmul.f32 0.03125, %v809_v41  ;;  %v822_v57 = vmul.f32 0.03125, %v818_v56  ;;  %v404_v41 = vmul.f32 %v2101_v38, %v397_v37 }
 0x189   :  { %v813_v43 = vsub.f32 %v803_v15, %v811_v42  ;;  %v824_v58 = vadd.f32 1e-05, %v822_v57  ;;  %v408_v42 = vld [vmem:[#allocation2 + $0x4] sm:$0xff] }
 0x18b   :  { %v815_v44 = vmul.f32 %v813_v43, %v813_v43  ;;  %1697 = vrsqrt.f32 %v824_v58 }
 0x18d   :  { %v1694_v45 = vpop.eup %1693  ;;  %v819_v47 = vsel %vm127_vm0, %v815_v44, 0.0 }
 0x18e   :  { %v162_v48 = vmul.f32 %v1694_v45, %v146_v8  ;;  %820 = vadd.xlane.f32.xlu1 %v819_v47  ;;  %v123_v8 = vld [vmem:[%s2377_s10 + $0x8] sm:$0xff] }
 0x18f   :  { %v1652_v10 = vpack.c.bf16 %v123_v8, %v122_v7  ;;  %v419_v47 = vld [vmem:[#allocation2 + $0x5] sm:$0xff] }
 0x190   :  { %v170_v50 = vmul.f32 %v1445_v46, %v162_v48  ;;  %v2112_v48 = vld [vmem:[#allocation9 + $0x5] ss:$0 sm:$0xff] }
 0x191   :  { %v1696_v51 = vpop.eup %1695  ;;  %1653 = vmatprep.subr.bf16.mxu0 %v1652_v10 }
 0x192   :  { %v178_v52 = vadd.f32 %v1446_v49, %v170_v50  ;;  %v163_v53 = vmul.f32 %v1696_v51, %v147_v12  ;;  %v1656_v12 = vpack.c.bf16 %v125_v11, %v124_v9  ;;  %v426_v51 = vmul.f32 %v2112_v48, %v419_v47  ;;  %v2132_v11 = vld [vmem:[#allocation9 + $0x9] ss:$0 sm:$0xff] }
 0x194   :  { %1578 = vmatprep.mubr.msk.f32.mxu0 %vm127_vm0, %v178_v52  ;;  %1589 = vmatprep.mubr.msk.f32.mxu1 %vm127_vm0, %v178_v52  ;;  %v171_v54 = vmul.f32 %v1445_v46, %v163_v53 }
 0x195   :  { %v1698_v59 = vpop.eup %1697 }
 0x196   :  { %v179_v55 = vadd.f32 %v1446_v49, %v171_v54  ;;  %v828_v60 = vmul.f32 %v1698_v59, %v812_v32  ;;  %v430_v54 = vld [vmem:[#allocation2 + $0x6] sm:$0xff] }
 0x198   :  { %1579 = vmatmul.mubr.msk.f32.vlgmr.msra.gmra.mrb[0].mxu0 %vm127_vm0, %v179_v55  ;;  %1590 = vmatmul.mubr.msk.f32.vlgmr.msra.gmra.mrb[0].mxu1 %vm127_vm0, %v179_v55  ;;  %v830_v61 = vmul.f32 %v1445_v46, %v828_v60  ;;  %v2117_v55 = vld [vmem:[#allocation9 + $0x6] ss:$0 sm:$0xff] }
 0x199   :  { %1663 = vmatpush3.bf16.msra.mxu1 %v1636_v21  ;;  %1655 = vmatpush3.bf16.msra.mxu0 %v1652_v10  ;;  %v437_v60 = vmul.f32 %v2117_v55, %v430_v54 }
 0x19a   :  { %1665 = vmatprep.subr.bf16.mxu1 %v1640_v26  ;;  %v2059_v62 = vadd.f32 %v1446_v49, %v830_v61  ;;  %1657 = vmatprep.subr.bf16.mxu0 %v1656_v12  ;;  %v441_v61 = vld [vmem:[#allocation2 + $0x7] sm:$0xff] }
 0x19c   :  { %1611 = vmatprep.mubr.msk.f32.mxu1 %vm127_vm0, %v2059_v62 }
 0x19d   :  { %1667 = vmatpush3.bf16.msra.mxu1 %v1640_v26  ;;  %1659 = vmatpush3.bf16.msra.mxu0 %v1656_v12  ;;  %v2094_v26 = vld [vmem:[#allocation9 + $0x1] ss:$0 sm:$0xff] }
 0x19e   :  { %1677 = vmatprep.subr.bf16.mxu1 %v1652_v10  ;;  %1669 = vmatprep.subr.bf16.mxu0 %v2039_v25  ;;  %v382_v28 = vmul.f32 %v2094_v26, %v375_v24 }
 0x1a0   :  { %v384_v33 = vadd.f32 %v382_v28, %v371_v27 }
 0x1a2   :  { %v395_v40 = vadd.f32 %v393_v34, %v384_v33  ;;  %v2144_v33 = vld [vmem:[#allocation9 + $0xc] ss:$0 sm:$0xff] }
 0x1a4   :  { %v406_v44 = vadd.f32 %v404_v41, %v395_v40  ;;  %v2148_v40 = vld [vmem:[#allocation9 + $0xd] ss:$0 sm:$0xff] }
 0x21b   :  { %v821_v0 = vpop.xlane.xlu1 %820 }
 0x21c   :  { %v823_v1 = vmul.f32 0.03125, %v821_v0 }
 0x21e   :  { %v825_v2 = vadd.f32 1e-05, %v823_v1  ;;  %v448_v1 = vmul.f32 %v2122_v63, %v441_v61 }
 0x220   :  { %1699 = vrsqrt.f32 %v825_v2  ;;  %v2125_v2 = vld [vmem:[#allocation9 + $0x8] ss:$0 sm:$0xff] }
 0x22a   :  { %v1700_v3 = vpop.eup %1699 }
 0x22b   :  { %v829_v4 = vmul.f32 %v1700_v3, %v813_v43  ;;  %v2104_v43 = vld [vmem:[#allocation9 + $0x4] ss:$0 sm:$0xff] }
 0x22c   :  { %v415_v45 = vmul.f32 %v2104_v43, %v408_v42 }
 0x22d   :  { %v831_v5 = vmul.f32 %v1445_v46, %v829_v4  ;;  %v2110_v46 = vld [vmem:[%s2371_s4] ss:$0 sm:$0xff] }
 0x22e   :  { %v417_v50 = vadd.f32 %v415_v45, %v406_v44 }
 0x22f   :  { %v2068_v6 = vadd.f32 %v1446_v49, %v831_v5 }
 0x230   :  { %v428_v59 = vadd.f32 %v426_v51, %v417_v50 }
 0x231   :  { %1612 = vmatmul.mubr.msk.f32.vlgmr.msra.gmra.mrb[2].mxu1 %vm127_vm0, %v2068_v6 }
 0x232   :  { %1679 = vmatpush3.bf16.msra.mxu1 %v1652_v10  ;;  %v439_v0 = vadd.f32 %v437_v60, %v428_v59 }
 0x233   :  { %1681 = vmatprep.subr.bf16.mxu1 %v1656_v12 }
 0x234   :  { %v2127_v7 = vadd.f32 %v448_v1, %v439_v0  ;;  %v2160_v0 = vld [vmem:[#allocation9 + $0x10] ss:$0 sm:$0xff] }
 0x236   :  { %1683 = vmatpush3.bf16.msra.mxu1 %v1656_v12 }
 0x26b   :  { %v1580_v14 = vpop.f32.mrb[0].mxu0  ;;  %v1591_v15 = vpop.f32.mrb[0].mxu1 }
 0x26c   :  { %v345_v16 = vadd.f32 %v1591_v15, %v2087_v13  ;;  %v258_v17 = vpop.f32.mrb[1].mxu0  ;;  %v339_v18 = vpop.f32.mrb[1].mxu1  ;;  %v264_v49 = vadd.f32 %v1580_v14, %v2110_v46 }
 0x26d   :  { %v340_v19 = vadd.f32 %v2087_v13, %v339_v18  ;;  %v259_v53 = vadd.f32 %v2110_v46, %v258_v17 }
 0x26e   :  { %v1454_v20 = vmul.f32 -1.442695, %v345_v16  ;;  %v2135_v16 = vld [vmem:[#allocation9 + $0xa] ss:$0 sm:$0xff] }
 0x26f   :  { %v1453_v21 = vmul.f32 -1.442695, %v340_v19 }
 0x270   :  { %1701 = vpow2.f32 %v1454_v20 }
 0x271   :  { %1703 = vpow2.f32 %v1453_v21 }
 0x27a   :  { %v1702_v32 = vpop.eup %1701 }
 0x27b   :  { %v1704_v35 = vpop.eup %1703  ;;  %v355_v36 = vadd.f32 1.0, %v1702_v32 }
 0x27c   :  { %v354_v39 = vadd.f32 1.0, %v1704_v35 }
 0x27d   :  { %1705 = vrcp.f32 %v355_v36 }
 0x27e   :  { %1707 = vrcp.f32 %v354_v39 }
 0x287   :  { %v1706_v52 = vpop.eup %1705 }
 0x288   :  { %v1708_v56 = vpop.eup %1707  ;;  %v361_v57 = vmul.f32 %v1706_v52, %v264_v49  ;;  %v2152_v49 = vld [vmem:[#allocation9 + $0xe] ss:$0 sm:$0xff] }
 0x289   :  { %v360_v58 = vmul.f32 %v1708_v56, %v259_v53  ;;  %v2156_v56 = vld [vmem:[#allocation9 + $0xf] ss:$0 sm:$0xff] }
 0x28a   :  { %363 = vst.msk [vmem:[#allocation2 + $0x17] sm:$0xff] %vm127_vm0, %v361_v57 }
 0x28b   :  { %362 = vst.msk [vmem:[#allocation2 + $0xf] sm:$0xff] %vm127_vm0, %v360_v58 }
 0x292   :  { %v365_v3 = vld [vmem:[#allocation2 + $0x8] sm:$0xff]  ;;  %v452_v50 = vld [vmem:[#allocation2 + $0x10] sm:$0xff] }
 0x293   :  { %v376_v4 = vld [vmem:[#allocation2 + $0x9] sm:$0xff]  ;;  %v372_v8 = vmul.f32 %v2092_v23, %v365_v3  ;;  %v458_v10 = vmul.f32 %v2125_v2, %v365_v3  ;;  %v462_v57 = vld [vmem:[#allocation2 + $0x11] sm:$0xff]  ;;  %v459_v61 = vmul.f32 %v2125_v2, %v452_v50 }
 0x294   :  { %v387_v5 = vld [vmem:[#allocation2 + $0xa] sm:$0xff]  ;;  %v383_v9 = vmul.f32 %v2094_v26, %v376_v4  ;;  %v468_v19 = vmul.f32 %v2132_v11, %v376_v4  ;;  %v472_v1 = vld [vmem:[#allocation2 + $0x12] sm:$0xff] }
 0x295   :  { %v398_v12 = vld [vmem:[#allocation2 + $0xb] sm:$0xff]  ;;  %v394_v15 = vmul.f32 %v2098_v31, %v387_v5  ;;  %v460_v18 = vadd.f32 %v458_v10, %v2127_v7  ;;  %v478_v28 = vmul.f32 %v2135_v16, %v387_v5  ;;  %v482_v10 = vld [vmem:[#allocation2 + $0x13] sm:$0xff] }
 0x296   :  { %v385_v14 = vadd.f32 %v383_v9, %v372_v8  ;;  %v409_v17 = vld [vmem:[#allocation2 + $0xc] sm:$0xff]  ;;  %v405_v21 = vmul.f32 %v2101_v38, %v398_v12  ;;  %v488_v36 = vmul.f32 %v2140_v22, %v398_v12  ;;  %v469_v8 = vmul.f32 %v2132_v11, %v462_v57  ;;  %v2164_v9 = vld [vmem:[#allocation9 + $0x11] ss:$0 sm:$0xff] }
 0x297   :  { %v420_v24 = vld [vmem:[#allocation2 + $0xd] sm:$0xff]  ;;  %v470_v27 = vadd.f32 %v468_v19, %v460_v18  ;;  %v416_v32 = vmul.f32 %v2104_v43, %v409_v17  ;;  %v498_v44 = vmul.f32 %v2144_v33, %v409_v17  ;;  %v479_v17 = vmul.f32 %v2135_v16, %v472_v1  ;;  %v2168_v18 = vld [vmem:[#allocation9 + $0x12] ss:$0 sm:$0xff] }
 0x298   :  { %v396_v20 = vadd.f32 %v394_v15, %v385_v14  ;;  %v431_v34 = vld [vmem:[#allocation2 + $0xe] sm:$0xff]  ;;  %v427_v39 = vmul.f32 %v2112_v48, %v420_v24  ;;  %v508_v52 = vmul.f32 %v2148_v40, %v420_v24  ;;  %v538_v14 = vmul.f32 %v2160_v0, %v452_v50  ;;  %v522_v50 = vld [vmem:[#allocation2 + $0x17] sm:$0xff] }
 0x299   :  { %v480_v35 = vadd.f32 %v478_v28, %v470_v27  ;;  %v442_v41 = vld [vmem:[#allocation2 + $0xf] sm:$0xff]  ;;  %v438_v47 = vmul.f32 %v2117_v55, %v431_v34  ;;  %v518_v59 = vmul.f32 %v2152_v49, %v431_v34  ;;  %v489_v27 = vmul.f32 %v2140_v22, %v482_v10  ;;  %v2172_v28 = vld [vmem:[#allocation9 + $0x13] ss:$0 sm:$0xff] }
 0x29a   :  { %v407_v30 = vadd.f32 %v405_v21, %v396_v20  ;;  %v449_v54 = vmul.f32 %v2122_v63, %v442_v41  ;;  %v528_v4 = vmul.f32 %v2156_v56, %v442_v41  ;;  %v492_v19 = vld [vmem:[#allocation2 + $0x14] sm:$0xff]  ;;  %v548_v21 = vmul.f32 %v2164_v9, %v462_v57  ;;  %v2184_v57 = vld [vmem:[#allocation9 + $0x16] ss:$0 sm:$0xff] }
 0x29b   :  { %v490_v42 = vadd.f32 %v488_v36, %v480_v35  ;;  %v558_v34 = vmul.f32 %v2168_v18, %v472_v1  ;;  %v499_v36 = vmul.f32 %v2144_v33, %v492_v19  ;;  %v529_v1 = vmul.f32 %v2156_v56, %v522_v50 }
 0x29c   :  { %v418_v37 = vadd.f32 %v416_v32, %v407_v30  ;;  %v502_v30 = vld [vmem:[#allocation2 + $0x15] sm:$0xff] }
 0x29d   :  { %v500_v51 = vadd.f32 %v498_v44, %v490_v42  ;;  %v568_v42 = vmul.f32 %v2172_v28, %v482_v10 }
 0x29e   :  { %v429_v45 = vadd.f32 %v427_v39, %v418_v37  ;;  %v2176_v37 = vld [vmem:[#allocation9 + $0x14] ss:$0 sm:$0xff]  ;;  %v512_v39 = vld [vmem:[#allocation2 + $0x16] sm:$0xff] }
 0x29f   :  { %v510_v58 = vadd.f32 %v508_v52, %v500_v51  ;;  %v578_v52 = vmul.f32 %v2176_v37, %v492_v19 }
 0x2a0   :  { %v440_v53 = vadd.f32 %v438_v47, %v429_v45  ;;  %v509_v45 = vmul.f32 %v2148_v40, %v502_v30  ;;  %v2180_v47 = vld [vmem:[#allocation9 + $0x15] ss:$0 sm:$0xff] }
 0x2a1   :  { %v520_v3 = vadd.f32 %v518_v59, %v510_v58  ;;  %v532_v58 = vld [vmem:[#allocation2 + $0x18] sm:$0xff] }
 0x2a2   :  { %v451_v60 = vadd.f32 %v449_v54, %v440_v53  ;;  %v519_v54 = vmul.f32 %v2152_v49, %v512_v39 }
 0x2a3   :  { %v530_v12 = vadd.f32 %v528_v4, %v520_v3  ;;  %v2188_v3 = vld [vmem:[#allocation9 + $0x17] ss:$0 sm:$0xff]  ;;  %v542_v4 = vld [vmem:[#allocation2 + $0x19] sm:$0xff] }
 0x2a4   :  { %v461_v5 = vadd.f32 %v459_v61, %v451_v60  ;;  %v588_v60 = vmul.f32 %v2180_v47, %v502_v30  ;;  %v608_v19 = vmul.f32 %v2188_v3, %v522_v50  ;;  %v2204_v50 = vld [vmem:[#allocation9 + $0x1b] ss:$0 sm:$0xff] }
 0x2a5   :  { %v540_v20 = vadd.f32 %v538_v14, %v530_v12  ;;  %v539_v12 = vmul.f32 %v2160_v0, %v532_v58  ;;  %v2192_v14 = vld [vmem:[#allocation9 + $0x18] ss:$0 sm:$0xff] }
 0x2a6   :  { %v471_v15 = vadd.f32 %v469_v8, %v461_v5  ;;  %v598_v8 = vmul.f32 %v2184_v57, %v512_v39  ;;  %v572_v39 = vld [vmem:[#allocation2 + $0x1c] sm:$0xff] }
 0x2a7   :  { %v550_v32 = vadd.f32 %v548_v21, %v540_v20  ;;  %v549_v21 = vmul.f32 %v2164_v9, %v542_v4 }
 0x2a8   :  { %v481_v24 = vadd.f32 %v479_v17, %v471_v15  ;;  %v552_v15 = vld [vmem:[#allocation2 + $0x1a] sm:$0xff] }
 0x2a9   :  { %v560_v41 = vadd.f32 %v558_v34, %v550_v32  ;;  %v618_v32 = vmul.f32 %v2192_v14, %v532_v58  ;;  %v579_v58 = vmul.f32 %v2176_v37, %v572_v39 }
 0x2aa   :  { %v491_v35 = vadd.f32 %v489_v27, %v481_v24  ;;  %v2196_v24 = vld [vmem:[#allocation9 + $0x19] ss:$0 sm:$0xff]  ;;  %v562_v27 = vld [vmem:[#allocation2 + $0x1b] sm:$0xff] }
 0x2ab   :  { %v570_v51 = vadd.f32 %v568_v42, %v560_v41  ;;  %v628_v42 = vmul.f32 %v2196_v24, %v542_v4 }
 0x2ac   :  { %v501_v44 = vadd.f32 %v499_v36, %v491_v35  ;;  %v559_v35 = vmul.f32 %v2168_v18, %v552_v15  ;;  %v2200_v36 = vld [vmem:[#allocation9 + $0x1a] ss:$0 sm:$0xff] }
 0x2ad   :  { %v580_v59 = vadd.f32 %v578_v52, %v570_v51  ;;  %v582_v51 = vld [vmem:[#allocation2 + $0x1d] sm:$0xff] }
 0x2ae   :  { %v511_v53 = vadd.f32 %v509_v45, %v501_v44  ;;  %v569_v45 = vmul.f32 %v2172_v28, %v562_v27 }
 0x2af   :  { %v590_v5 = vadd.f32 %v588_v60, %v580_v59  ;;  %v2208_v59 = vld [vmem:[#allocation9 + $0x1c] ss:$0 sm:$0xff]  ;;  %v592_v60 = vld [vmem:[#allocation2 + $0x1e] sm:$0xff] }
 0x2b0   :  { %v521_v61 = vadd.f32 %v519_v54, %v511_v53  ;;  %v638_v53 = vmul.f32 %v2200_v36, %v552_v15 }
 0x2b1   :  { %v600_v17 = vadd.f32 %v598_v8, %v590_v5  ;;  %v648_v5 = vmul.f32 %v2204_v50, %v562_v27  ;;  %v589_v8 = vmul.f32 %v2180_v47, %v582_v51 }
 0x2b2   :  { %v531_v10 = vadd.f32 %v529_v1, %v521_v61  ;;  %v602_v61 = vld [vmem:[#allocation2 + $0x1f] sm:$0xff] }
 0x2b3   :  { %v610_v30 = vadd.f32 %v608_v19, %v600_v17  ;;  %v658_v19 = vmul.f32 %v2208_v59, %v572_v39 }
 0x2b4   :  { %v541_v20 = vadd.f32 %v539_v12, %v531_v10  ;;  %v2212_v10 = vld [vmem:[#allocation9 + $0x1d] ss:$0 sm:$0xff]  ;;  %v612_v12 = vld [vmem:[#allocation2 + $0x20] sm:$0xff] }
 0x2b5   :  { %v620_v41 = vadd.f32 %v618_v32, %v610_v30  ;;  %v2219_v30 = vld [vmem:[#allocation9 + $0x1e] ss:$0 sm:$0xff]  ;;  %v622_v32 = vld [vmem:[#allocation2 + $0x21] sm:$0xff]  ;;  %v668_v27 = vmul.f32 %v2212_v10, %v582_v51 }
 0x2b6   :  { %v551_v34 = vadd.f32 %v549_v21, %v541_v20  ;;  %v599_v20 = vmul.f32 %v2184_v57, %v592_v60  ;;  %v2217_v21 = vmul.f32 %v2188_v3, %v602_v61  ;;  %v678_v39 = vmul.f32 %v2219_v30, %v592_v60  ;;  %v652_v60 = vld [vmem:[#allocation2 + $0x24] sm:$0xff] }
 0x2b7   :  { %v630_v52 = vadd.f32 %v628_v42, %v620_v41  ;;  %v2223_v41 = vmul.f32 %v2192_v14, %v612_v12  ;;  %v632_v42 = vld [vmem:[#allocation2 + $0x22] sm:$0xff] }
 0x2b8   :  { %v561_v44 = vadd.f32 %v559_v35, %v551_v34  ;;  %v662_v12 = vld [vmem:[#allocation2 + $0x25] sm:$0xff] }
 0x2b9   :  { %v640_v1 = vadd.f32 %v638_v53, %v630_v52  ;;  %v2233_v53 = vmul.f32 %v2196_v24, %v622_v32 }
 0x2ba   :  { %v571_v54 = vadd.f32 %v569_v45, %v561_v44  ;;  %v2229_v45 = vld [vmem:[%s2375_s8] ss:$0 sm:$0xff] }
 0x2bb   :  { %v650_v17 = vadd.f32 %v648_v5, %v640_v1  ;;  %v2239_v1 = vmul.f32 %v2200_v36, %v632_v42 }
 0x2bc   :  { %v581_v4 = vadd.f32 %v579_v58, %v571_v54  ;;  %v642_v54 = vld [vmem:[#allocation2 + $0x23] sm:$0xff]  ;;  %v2235_v58 = vld [vmem:[#allocation11] ss:$0 sm:$0xff] }
 0x2bd   :  { %v660_v34 = vadd.f32 %v658_v19, %v650_v17  ;;  %v2248_v19 = vmul.f32 %v2208_v59, %v652_v60 }
 0x2be   :  { %v591_v15 = vadd.f32 %v589_v8, %v581_v4  ;;  %v2243_v4 = vmul.f32 %v2204_v50, %v642_v54 }
 0x2bf   :  { %v670_v44 = vadd.f32 %v668_v27, %v660_v34  ;;  %v2252_v34 = vmul.f32 %v2212_v10, %v662_v12 }
 0x2c0   :  { %v601_v35 = vadd.f32 %v599_v20, %v591_v15  ;;  %v672_v20 = vld [vmem:[#allocation2 + $0x26] sm:$0xff] }
 0x2c1   :  { %v680_v51 = vadd.f32 %v678_v39, %v670_v44 }
 0x2c2   :  { %v611_v52 = vadd.f32 %v2217_v21, %v601_v35  ;;  %v2256_v35 = vmul.f32 %v2219_v30, %v672_v20 }
 0x2c3   :  { %v688_v5 = vmul.f32 %v2229_v45, %v680_v51 }
 0x2c4   :  { %v621_v61 = vadd.f32 %v2223_v41, %v611_v52 }
 0x2c5   :  { %v696_v17 = vadd.f32 %v2235_v58, %v688_v5 }
 0x2c6   :  { %v631_v8 = vadd.f32 %v2233_v53, %v621_v61 }
 0x2c7   :  { %v1488_v32 = vmul.f32 -1.442695, %v696_v17 }
 0x2c8   :  { %v641_v15 = vadd.f32 %v2239_v1, %v631_v8 }
 0x2c9   :  { %1709 = vpow2.f32 %v1488_v32 }
 0x2ca   :  { %v651_v27 = vadd.f32 %v2243_v4, %v641_v15 }
 0x2cc   :  { %v661_v42 = vadd.f32 %v2248_v19, %v651_v27 }
 0x2ce   :  { %v671_v44 = vadd.f32 %v2252_v34, %v661_v42  ;;  %v2275_v42 = vld [vmem:[%s2378_s11] ss:$0 sm:$0xff]  ;;  %s1881_s11 = smov [#allocation12]  }
 0x2cf   :  { %s1431_s24 = sshll.u32 %s1881_s11, 4  ;;  %s1432_s24 = int_to_ptr.vmem [resolvable:$true] %s1431_s24 }
 0x2d0   :  { %v681_v39 = vadd.f32 %v2256_v35, %v671_v44  ;;  %s1843_s26 = scalar_lea.vmem %s1432_s24, 512  ;;  %p1848_p13 = scmp.lt.s32.totalorder %s1432_s24, %s1432_s24 }
 0x2d1   :  { %p1844_p12 = scmp.ne.s32.totalorder %s1432_s24, %s1843_s26  ;;  %p1849_p0 = scmp.lt.s32.totalorder %s1843_s26, %s1843_s26 }
 0x2d2   :  { %v689_v52 = vmul.f32 %v2229_v45, %v681_v39 }
 0x2d3   :  { %v1710_v51 = vpop.eup %1709  ;;  %p1850_p1 = por %p1849_p0, %p1848_p13 }
 0x2d4   :  { %v697_v54 = vadd.f32 %v2235_v58, %v689_v52  ;;  %v704_v61 = vadd.f32 1.0, %v1710_v51 }
 0x2d5   :  { %p1851_p2 = pnand %p1850_p1, %p1844_p12 }
 0x2d6   :  { %v1489_v60 = vmul.f32 -1.442695, %v697_v54  ;;  %1711 = vrcp.f32 %v704_v61 }
 0x2d8   :  { %1713 = vpow2.f32 %v1489_v60 }
 0x2e0   :  { %v1712_v5 = vpop.eup %1711 }
 0x2e1   :  { %v710_v12 = vmul.f32 %v1712_v5, %v696_v17 }
 0x2e2   :  { %v1714_v8 = vpop.eup %1713 }
 0x2e3   :  { %v705_v15 = vadd.f32 1.0, %v1714_v8  ;;  %1600 = vmatprep.mubr.msk.f32.mxu0 %vm127_vm0, %v710_v12 }
 0x2e5   :  { %1715 = vrcp.f32 %v705_v15 }
 0x2ef   :  { %v1716_v20 = vpop.eup %1715 }
 0x2f0   :  { %v711_v32 = vmul.f32 %v1716_v20, %v697_v54 }
 0x2f2   :  { %1601 = vmatmul.mubr.msk.f32.vlgmr.msra.gmra.mrb[2].mxu0 %vm127_vm0, %v711_v32 }
 0x2f3   :  { %1671 = vmatpush3.bf16.msra.mxu0 %v2039_v25  ;;  %1622 = vmatprep.mubr.msk.f32.mxu0 %vm127_vm0, %v2059_v62 }
 0x2f4   :  { %1673 = vmatprep.subr.bf16.mxu0 %v2043_v29 }
 0x2f7   :  { %1675 = vmatpush3.bf16.msra.mxu0 %v2043_v29 }
 0x2fa   :  { %1623 = vmatmul.mubr.msk.f32.vlgmr.msra.gmra.mrb[4].mxu0 %vm127_vm0, %v2068_v6 }
 0x304   :  { %v1613_v17 = vpop.f32.mrb[2].mxu1 }
 0x305   :  { %v906_v27 = vpop.f32.mrb[3].mxu1  ;;  %v912_v15 = vadd.f32 %v1613_v17, %v2110_v46 }
 0x306   :  { %v907_v32 = vadd.f32 %v2110_v46, %v906_v27 }
 0x3c5   :  { %v1602_v44 = vpop.f32.mrb[2].mxu0 }
 0x3c6   :  { %v796_v25 = vadd.f32 %v1602_v44, %v2275_v42  ;;  %v790_v39 = vpop.f32.mrb[3].mxu0 }
 0x3c7   :  { %v791_v62 = vadd.f32 %v2275_v42, %v790_v39 }
 0x3c8   :  { %800 = vst.msk [vmem:[#allocation12 + $0x8] sm:$0xff] %vm127_vm0, %v796_v25 }
 0x3c9   :  { %799 = vst.msk [vmem:[#allocation12] sm:$0xff] %vm127_vm0, %v791_v62 }
 0x3cd   :  { %v1624_v29 = vpop.f32.mrb[4].mxu0 }
 0x3ce   :  { %v987_v6 = vadd.f32 %v1624_v29, %v2087_v13  ;;  %v981_v52 = vpop.f32.mrb[5].mxu0 }
 0x3cf   :  { %v982_v54 = vadd.f32 %v2087_v13, %v981_v52 }
 0x3d0   :  { %v1498_v51 = vmul.f32 -1.442695, %v987_v6 }
 0x3d1   :  { %v1497_v61 = vmul.f32 -1.442695, %v982_v54 }
 0x3d2   :  { %1717 = vpow2.f32 %v1498_v51 }
 0x3d3   :  { %1719 = vpow2.f32 %v1497_v61 }
 0x3dc   :  { %v1718_v60 = vpop.eup %1717 }
 0x3dd   :  { %v1720_v5 = vpop.eup %1719  ;;  %v997_v8 = vadd.f32 1.0, %v1718_v60 }
 0x3de   :  { %v996_v12 = vadd.f32 1.0, %v1720_v5 }
 0x3df   :  { %1721 = vrcp.f32 %v997_v8 }
 0x3e0   :  { %1723 = vrcp.f32 %v996_v12 }
 0x3e9   :  { %v1722_v20 = vpop.eup %1721 }
 0x3ea   :  { %v1724_v44 = vpop.eup %1723  ;;  %v1003_v25 = vmul.f32 %v1722_v20, %v912_v15 }
 0x3eb   :  { %v1002_v39 = vmul.f32 %v1724_v44, %v907_v32 }
 0x3ec   :  { %1005 = vst.msk [vmem:[#allocation2 + $0x17] sm:$0xff] %vm127_vm0, %v1003_v25 }
 0x3ed   :  { %1004 = vst.msk [vmem:[#allocation2 + $0xf] sm:$0xff] %vm127_vm0, %v1002_v39 }
 0x3f4   :  { %v1007_v13 = vld [vmem:[#allocation2 + $0x8] sm:$0xff] }
 0x3f5   :  { %v1018_v62 = vld [vmem:[#allocation2 + $0x9] sm:$0xff]  ;;  %v1014_v6 = vmul.f32 %v2092_v23, %v1007_v13  ;;  %v1100_v54 = vmul.f32 %v2125_v2, %v1007_v13 }
 0x3f6   :  { %v1029_v29 = vld [vmem:[#allocation2 + $0xa] sm:$0xff]  ;;  %v1025_v52 = vmul.f32 %v2094_v26, %v1018_v62  ;;  %v1110_v60 = vmul.f32 %v2132_v11, %v1018_v62 }
 0x3f7   :  { %v1040_v17 = vld [vmem:[#allocation2 + $0xb] sm:$0xff]  ;;  %v1036_v46 = vmul.f32 %v2098_v31, %v1029_v29  ;;  %v1102_v61 = vadd.f32 %v1100_v54, %v2127_v7  ;;  %v1120_v23 = vmul.f32 %v2135_v16, %v1029_v29 }
 0x3f8   :  { %v1027_v51 = vadd.f32 %v1025_v52, %v1014_v6  ;;  %v1051_v27 = vld [vmem:[#allocation2 + $0xc] sm:$0xff]  ;;  %v1047_v8 = vmul.f32 %v2101_v38, %v1040_v17  ;;  %v1130_v25 = vmul.f32 %v2140_v22, %v1040_v17 }
 0x3f9   :  { %v1062_v12 = vld [vmem:[#allocation2 + $0xd] sm:$0xff]  ;;  %v1112_v15 = vadd.f32 %v1110_v60, %v1102_v61  ;;  %v1058_v26 = vmul.f32 %v2104_v43, %v1051_v27  ;;  %v1140_v62 = vmul.f32 %v2144_v33, %v1051_v27 }
 0x3fa   :  { %v1038_v5 = vadd.f32 %v1036_v46, %v1027_v51  ;;  %v1073_v32 = vld [vmem:[#allocation2 + $0xe] sm:$0xff]  ;;  %v1069_v39 = vmul.f32 %v2112_v48, %v1062_v12  ;;  %v1150_v29 = vmul.f32 %v2148_v40, %v1062_v12 }
 0x3fb   :  { %v1122_v44 = vadd.f32 %v1120_v23, %v1112_v15  ;;  %v1084_v7 = vld [vmem:[#allocation2 + $0xf] sm:$0xff]  ;;  %v1080_v38 = vmul.f32 %v2117_v55, %v1073_v32  ;;  %v1160_v17 = vmul.f32 %v2152_v49, %v1073_v32 }
 0x3fc   :  { %v1049_v20 = vadd.f32 %v1047_v8, %v1038_v5  ;;  %v1094_v52 = vld [vmem:[#allocation2 + $0x10] sm:$0xff]  ;;  %v1091_v43 = vmul.f32 %v2122_v63, %v1084_v7  ;;  %v1170_v27 = vmul.f32 %v2156_v56, %v1084_v7 }
 0x3fd   :  { %v1132_v13 = vadd.f32 %v1130_v25, %v1122_v44  ;;  %v1104_v46 = vld [vmem:[#allocation2 + $0x11] sm:$0xff]  ;;  %v1101_v48 = vmul.f32 %v2125_v2, %v1094_v52  ;;  %v1180_v12 = vmul.f32 %v2160_v0, %v1094_v52 }
 0x3fe   :  { %v1060_v31 = vadd.f32 %v1058_v26, %v1049_v20  ;;  %v1114_v5 = vld [vmem:[#allocation2 + $0x12] sm:$0xff]  ;;  %v1111_v55 = vmul.f32 %v2132_v11, %v1104_v46  ;;  %v1190_v32 = vmul.f32 %v2164_v9, %v1104_v46 }
 0x3ff   :  { %v1142_v54 = vadd.f32 %v1140_v62, %v1132_v13  ;;  %v1124_v23 = vld [vmem:[#allocation2 + $0x13] sm:$0xff]  ;;  %v1121_v63 = vmul.f32 %v2135_v16, %v1114_v5  ;;  %v1200_v7 = vmul.f32 %v2168_v18, %v1114_v5 }
 0x400   :  { %v1071_v6 = vadd.f32 %v1069_v39, %v1060_v31  ;;  %v1134_v44 = vld [vmem:[#allocation2 + $0x14] sm:$0xff]  ;;  %v1131_v2 = vmul.f32 %v2140_v22, %v1124_v23  ;;  %v1210_v52 = vmul.f32 %v2172_v28, %v1124_v23 }
 0x401   :  { %v1152_v61 = vadd.f32 %v1150_v29, %v1142_v54  ;;  %v1144_v39 = vld [vmem:[#allocation2 + $0x15] sm:$0xff]  ;;  %v1141_v11 = vmul.f32 %v2144_v33, %v1134_v44 }
 0x402   :  { %v1082_v51 = vadd.f32 %v1080_v38, %v1071_v6  ;;  %v1154_v6 = vld [vmem:[#allocation2 + $0x16] sm:$0xff]  ;;  %v1151_v16 = vmul.f32 %v2148_v40, %v1144_v39 }
 0x403   :  { %v1162_v8 = vadd.f32 %v1160_v17, %v1152_v61  ;;  %v1164_v29 = vld [vmem:[#allocation2 + $0x17] sm:$0xff]  ;;  %v1161_v22 = vmul.f32 %v2152_v49, %v1154_v6 }
 0x404   :  { %v1093_v60 = vadd.f32 %v1091_v43, %v1082_v51  ;;  %v1220_v43 = vmul.f32 %v2176_v37, %v1134_v44  ;;  %v1174_v61 = vld [vmem:[#allocation2 + $0x18] sm:$0xff]  ;;  %v1171_v33 = vmul.f32 %v2156_v56, %v1164_v29 }
 0x405   :  { %v1172_v20 = vadd.f32 %v1170_v27, %v1162_v8  ;;  %v1184_v5 = vld [vmem:[#allocation2 + $0x19] sm:$0xff]  ;;  %v1240_v27 = vmul.f32 %v2184_v57, %v1154_v6  ;;  %v1181_v40 = vmul.f32 %v2160_v0, %v1174_v61  ;;  %v1260_v44 = vmul.f32 %v2192_v14, %v1174_v61 }
 0x406   :  { %v1103_v15 = vadd.f32 %v1101_v48, %v1093_v60  ;;  %v1230_v60 = vmul.f32 %v2180_v47, %v1144_v39  ;;  %v1191_v49 = vmul.f32 %v2164_v9, %v1184_v5 }
 0x407   :  { %v1182_v25 = vadd.f32 %v1180_v12, %v1172_v20  ;;  %v1250_v20 = vmul.f32 %v2188_v3, %v1164_v29 }
 0x408   :  { %v1113_v26 = vadd.f32 %v1111_v55, %v1103_v15  ;;  %v1194_v55 = vld [vmem:[#allocation2 + $0x1a] sm:$0xff] }
 0x409   :  { %v1192_v13 = vadd.f32 %v1190_v32, %v1182_v25  ;;  %v1201_v56 = vmul.f32 %v2168_v18, %v1194_v55  ;;  %v1214_v32 = vld [vmem:[#allocation2 + $0x1c] sm:$0xff]  ;;  %v1280_v3 = vmul.f32 %v2200_v36, %v1194_v55 }
 0x40a   :  { %v1123_v31 = vadd.f32 %v1121_v63, %v1113_v26  ;;  %v1204_v26 = vld [vmem:[#allocation2 + $0x1b] sm:$0xff]  ;;  %v1221_v9 = vmul.f32 %v2176_v37, %v1214_v32 }
 0x40b   :  { %v1202_v38 = vadd.f32 %v1200_v7, %v1192_v13  ;;  %v1211_v0 = vmul.f32 %v2172_v28, %v1204_v26  ;;  %v1224_v13 = vld [vmem:[#allocation2 + $0x1d] sm:$0xff]  ;;  %v1290_v14 = vmul.f32 %v2204_v50, %v1204_v26 }
 0x40c   :  { %v1133_v62 = vadd.f32 %v1131_v2, %v1123_v31  ;;  %v1270_v2 = vmul.f32 %v2196_v24, %v1184_v5  ;;  %v1231_v18 = vmul.f32 %v2180_v47, %v1224_v13  ;;  %v1300_v24 = vmul.f32 %v2208_v59, %v1214_v32 }
 0x40d   :  { %v1212_v51 = vadd.f32 %v1210_v52, %v1202_v38  ;;  %v1310_v29 = vmul.f32 %v2212_v10, %v1224_v13 }
 0x40e   :  { %v1143_v54 = vadd.f32 %v1141_v11, %v1133_v62  ;;  %v1234_v11 = vld [vmem:[#allocation2 + $0x1e] sm:$0xff] }
 0x40f   :  { %v1222_v17 = vadd.f32 %v1220_v43, %v1212_v51  ;;  %v1241_v28 = vmul.f32 %v2184_v57, %v1234_v11  ;;  %v1320_v37 = vmul.f32 %v2219_v30, %v1234_v11 }
 0x410   :  { %v1153_v46 = vadd.f32 %v1151_v16, %v1143_v54 }
 0x411   :  { %v1232_v8 = vadd.f32 %v1230_v60, %v1222_v17 }
 0x412   :  { %v1163_v48 = vadd.f32 %v1161_v22, %v1153_v46 }
 0x413   :  { %v1242_v23 = vadd.f32 %v1240_v27, %v1232_v8 }
 0x414   :  { %v1173_v15 = vadd.f32 %v1171_v33, %v1163_v48 }
 0x415   :  { %v1252_v63 = vadd.f32 %v1250_v20, %v1242_v23 }
 0x416   :  { %v1183_v12 = vadd.f32 %v1181_v40, %v1173_v15 }
 0x417   :  { %v1262_v31 = vadd.f32 %v1260_v44, %v1252_v63 }
 0x418   :  { %v1193_v25 = vadd.f32 %v1191_v49, %v1183_v12 }
 0x419   :  { %v1272_v7 = vadd.f32 %v1270_v2, %v1262_v31 }
 0x41a   :  { %v1203_v39 = vadd.f32 %v1201_v56, %v1193_v25 }
 0x41b   :  { %v1282_v6 = vadd.f32 %v1280_v3, %v1272_v7 }
 0x41c   :  { %v1213_v62 = vadd.f32 %v1211_v0, %v1203_v39 }
 0x41d   :  { %v1292_v52 = vadd.f32 %v1290_v14, %v1282_v6 }
 0x41e   :  { %v1223_v38 = vadd.f32 %v1221_v9, %v1213_v62 }
 0x41f   :  { %v1302_v16 = vadd.f32 %v1300_v24, %v1292_v52 }
 0x420   :  { %v1233_v54 = vadd.f32 %v1231_v18, %v1223_v38 }
 0x421   :  { %v1312_v51 = vadd.f32 %v1310_v29, %v1302_v16 }
 0x422   :  { %v1243_v36 = vadd.f32 %v1241_v28, %v1233_v54 }
 0x423   :  { %v1322_v46 = vadd.f32 %v1320_v37, %v1312_v51 }
 0x424   :  { %v1253_v43 = vadd.f32 %v1243_v36, %v2217_v21 }
 0x425   :  { %v1324_v47 = vmul.f32 %v2229_v45, %v1322_v46 }
 0x426   :  { %v1263_v50 = vadd.f32 %v1253_v43, %v2223_v41 }
 0x427   :  { %v1326_v59 = vadd.f32 %v2235_v58, %v1324_v47 }
 0x428   :  { %v1273_v22 = vadd.f32 %v1263_v50, %v2233_v53 }
 0x429   :  { %v1530_v61 = vmul.f32 -1.442695, %v1326_v59 }
 0x42a   :  { %v1283_v57 = vadd.f32 %v1273_v22, %v2239_v1 }
 0x42b   :  { %1725 = vpow2.f32 %v1530_v61 }
 0x42c   :  { %v1293_v10 = vadd.f32 %v1283_v57, %v2243_v4 }
 0x42e   :  { %v1303_v17 = vadd.f32 %v1293_v10, %v2248_v19 }
 0x430   :  { %v1313_v30 = vadd.f32 %v1303_v17, %v2252_v34 }
 0x432   :  { %v1323_v21 = vadd.f32 %v1313_v30, %v2256_v35 }
 0x434   :  { %v1325_v41 = vmul.f32 %v2229_v45, %v1323_v21 }
 0x435   :  { %v1726_v48 = vpop.eup %1725 }
 0x436   :  { %v1327_v60 = vadd.f32 %v2235_v58, %v1325_v41  ;;  %v1334_v53 = vadd.f32 1.0, %v1726_v48 }
 0x438   :  { %v1531_v33 = vmul.f32 -1.442695, %v1327_v60  ;;  %1727 = vrcp.f32 %v1334_v53 }
 0x43a   :  { %1729 = vpow2.f32 %v1531_v33 }
 0x442   :  { %v1728_v1 = vpop.eup %1727 }
 0x443   :  { %v1340_v8 = vmul.f32 %v1728_v1, %v1326_v59 }
 0x444   :  { %v1730_v5 = vpop.eup %1729 }
 0x445   :  { %v1335_v4 = vadd.f32 1.0, %v1730_v5  ;;  %1633 = vmatprep.mubr.msk.f32.mxu1 %vm127_vm0, %v1340_v8 }
 0x447   :  { %1731 = vrcp.f32 %v1335_v4 }
 0x451   :  { %v1732_v19 = vpop.eup %1731 }
 0x452   :  { %v1341_v34 = vmul.f32 %v1732_v19, %v1327_v60 }
 0x454   :  { %1634 = vmatmul.mubr.msk.f32.vlgmr.msra.gmra.mrb[4].mxu1 %vm127_vm0, %v1341_v34 }
 0x527   :  { %v1635_v45 = vpop.f32.mrb[4].mxu1 }
 0x528   :  { %v1420_v58 = vadd.f32 %v1635_v45, %v2275_v42  ;;  %v1414_v35 = vpop.f32.mrb[5].mxu1 }
 0x529   :  { %v1415_v27 = vadd.f32 %v2275_v42, %v1414_v35 }
 0x52a   :  { %1425 = vst.msk [vmem:[#allocation12 + $0x18] sm:$0xff] %vm127_vm0, %v1420_v58 }
 0x52b   :  { %1424 = vst.msk [vmem:[#allocation12 + $0x10] sm:$0xff] %vm127_vm0, %v1415_v27 }
 0x52c   :  { %1854 = shalt.err (!%p1851_p2)
}
 0x52d   :  { %s1855_s5 = scalar_lea.hbm %s2379_s12, 512 }
 0x52e   :  { %p1856_p3 = scmp.ne.s32.totalorder %s2379_s12, %s1855_s5  ;;  %p1859_p4 = scmp.lt.u32.totalorder %s1855_s5, %s2379_s12 }
 0x530   :  { %p1861_p5 = pnand %p1859_p4, %p1856_p3 }
 0x532   :  { %1864 = shalt.err (!%p1861_p5)
}
 0x533   :  { %1437 = dma.vmem_to_hbm [thread:$0]  %s1432_s24, 512, %s2379_s12, [#allocation5], %s1875_s15, %s1875_s15, %s1876_s16  }
 0x534   :  { %1871 = dma.done.wait [#allocation5], 512  }
 0x535   :  { %1872 = vsyncadd [#allocation5], 4294966784 }
 0x536   :  { %1441 = vsyncpa [#allocation4], 1 }
 0x537   :  { %1442 = vsyncpa [#allocation7], 1 }
 0x538   :  { %1443 = vsyncpa [#allocation10], 1 }
 0x539   :  { %1444 = vsyncpa [#allocation5], 1 }

</bundles_post_ra>
